<compile_context>
chip_gen: v5e
topology: v5e:2x2
jax: 0.10.0
libtpu: 0.0.40
codegen_flags: <defaults>
</compile_context>

<pallas_src>
import functools

import jax
import jax.numpy as jnp
from jax import lax
from jax.experimental import pallas as pl
from jax.experimental.pallas import tpu as pltpu


def _up_dconv_kernel(att_ref, x_ref, wbank_ref, bbank_ref, shift_ref,
                     lmask_ref, rmask_ref, out_ref, w_sc, b_sc,
                     *, K, W2, T, HALO):
    """One grid step == (batch element b, flattened-HW tile t).

    att_ref   : (B, K)                 SMEM  softmax attention over experts
    x_ref     : (1, 1, Cin, T+2*HALO)  VMEM  bf16 flattened activation chunk (+halo)
    wbank_ref : (K, 9, Cout, Cin)      VMEM  bf16 expert weights, BN scale folded
    bbank_ref : (K, Cout, 1)           VMEM  f32 expert biases, BN scale folded
    shift_ref : (Cout, 1)              VMEM  f32 folded BatchNorm shift
    lmask_ref : (1, T)                 VMEM  bf16 mask for the kw=-1 taps
    rmask_ref : (1, T)                 VMEM  bf16 mask for the kw=+1 taps
    out_ref   : (1, Cout, T)           VMEM  f32
    w_sc      : (9, Cout, Cin) bf16    VMEM scratch: per-batch aggregated weights
    b_sc      : (Cout, 1)      f32     VMEM scratch: per-batch aggregated bias+shift
    """
    b = pl.program_id(0)
    t = pl.program_id(1)
    c_out = out_ref.shape[1]

    # ---- once per batch (hoisted out of the tile loop): mix the K expert
    # kernels with the attention weights, fold bias, cast to bf16 for the MXU.
    @pl.when(t == 0)
    def _aggregate():
        agg_w = att_ref[b, 0] * wbank_ref[0].astype(jnp.float32)   # (9, Cout, Cin)
        agg_b = att_ref[b, 0] * bbank_ref[0]                       # (Cout, 1)
        for k in range(1, K):
            ak = att_ref[b, k]
            agg_w = agg_w + ak * wbank_ref[k].astype(jnp.float32)
            agg_b = agg_b + ak * bbank_ref[k]
        w_sc[...] = agg_w.astype(jnp.bfloat16)
        b_sc[...] = agg_b + shift_ref[...]

    # ---- per tile: 3x3 / pad=1 conv over the flattened upsampled image ----
    lmask = lmask_ref[...]
    rmask = rmask_ref[...]

    # start the accumulator from the (BN-folded) bias -> epilogue is just ReLU.
    acc = jnp.broadcast_to(b_sc[...], (c_out, T))
    tap = 0
    for dr in (-1, 0, 1):                             # kernel row offset
        for dc in (-1, 0, 1):                         # kernel col offset
            off = HALO + dr * W2 + dc                 # static chunk-local offset
            xs = x_ref[0, 0, :, off:off + T]          # (Cin, T) bf16, static slice
            if dc == -1:
                xs = xs * lmask                       # zero wrapped left columns
            elif dc == 1:
                xs = xs * rmask                       # zero wrapped right columns
            acc = acc + jnp.dot(w_sc[tap], xs, preferred_element_type=jnp.float32)
            tap += 1

    out_ref[0] = jnp.maximum(acc, 0.0).astype(out_ref.dtype)


def _pick_hw_tile(H2, W2):
    """Flattened-HW tile size: multiple of W2 (tiles start on row boundaries)
    and of 128 (lane-dense output blocks); prefer >= 512 lanes."""
    HW2 = H2 * W2
    cands = [r * W2 for r in range(1, H2 + 1)
             if H2 % r == 0 and (r * W2) % 128 == 0]
    if not cands:
        return HW2                    # whole image as one (full-dim) block
    for t in cands:                   # ascending
        if t >= 512:
            return t
    return cands[-1]


def init_params(key, ch_in, ch_out, K=4, ratio=0.25, kernel_size=3):
    """Deterministic, shape-correct synthetic parameters (no checkpoint)."""
    hidden = K if ch_in == 3 else int(ch_in * ratio) + 1
    k1, k2, k3 = jax.random.split(key, 3)
    w1 = jax.random.normal(k1, (hidden, ch_in), jnp.float32) * jnp.sqrt(2.0 / hidden)
    w2 = jax.random.normal(k2, (K, hidden), jnp.float32) * jnp.sqrt(2.0 / K)
    b2 = jnp.zeros((K,), jnp.float32)
    fan_in = ch_in * kernel_size * kernel_size
    bound = float(jnp.sqrt(6.0 / fan_in))
    weight = jax.random.uniform(
        k3, (K, ch_out, ch_in, kernel_size, kernel_size), jnp.float32, -bound, bound)
    bias = jnp.zeros((K, ch_out), jnp.float32)
    return dict(
        w1=w1, w2=w2, b2=b2, weight=weight, bias=bias,
        bn_gamma=jnp.ones((ch_out,), jnp.float32),
        bn_beta=jnp.zeros((ch_out,), jnp.float32),
        bn_mean=jnp.zeros((ch_out,), jnp.float32),
        bn_var=jnp.ones((ch_out,), jnp.float32),
        bn_eps=1e-5,
    )


def up_conv_dconv(x, params, temperature=34):
    """Forward pass of up_conv_DConv.  x: (B, C_in, H, W) float32, NCHW."""
    B, C_in, H, W = x.shape
    K, C_out, _, KH, KW = params["weight"].shape
    H2, W2 = 2 * H, 2 * W
    HW2 = H2 * W2
    taps = KH * KW

    # --- attention2d branch (tiny; plain JAX glue).  Pooling x is identical to
    # pooling the nearest-upsampled x_up, so the 4x pooled reduction is skipped.
    pooled = x.mean(axis=(2, 3))                              # AdaptiveAvgPool2d(1)
    hdn = jax.nn.relu(pooled @ params["w1"].T)                # fc1 + relu
    logits = hdn @ params["w2"].T + params["b2"]              # fc2
    att = jax.nn.softmax(logits / temperature, axis=1)        # (B, K)

    # --- nn.Upsample(scale_factor=2, nearest) (only ~4x of x crosses HBM,
    # in bf16; the 9x im2col tensor is gone).
    # TODO(synk): fold the nearest upsample into the kernel (read each source
    # row/col twice) to also remove this activation materialization.
    x_up = jnp.repeat(jnp.repeat(x, 2, axis=2), 2, axis=3)    # (B, Cin, H2, W2)

    T = _pick_hw_tile(H2, W2)
    n_t = HW2 // T
    HALO = W2 + 1                                             # reach of the 3x3 taps
    chunk = T + 2 * HALO

    # flattened + zero "row padding"; overlapping per-tile chunks (halo
    # materialized, ~2*(W2+1)/T duplication) so every conv tap is a *static*
    # lane slice inside the kernel.
    x_flat = jnp.pad(x_up.reshape(B, C_in, HW2).astype(jnp.bfloat16),
                     ((0, 0), (0, 0), (HALO, HALO)))
    x_chunks = jnp.stack(
        [x_flat[:, :, t * T: t * T + chunk] for t in range(n_t)],
        axis=1)                                               # (B, n_t, Cin, chunk)

    # --- fold BatchNorm (inference mode, running stats) into the expert banks.
    # TODO(synk): train-mode batch statistics are not modeled.
    inv_std = 1.0 / jnp.sqrt(params["bn_var"] + params["bn_eps"])
    scale = params["bn_gamma"] * inv_std                      # (Cout,)
    shift = (params["bn_beta"] - params["bn_mean"] * scale).reshape(C_out, 1)
    wbank = params["weight"] * scale[None, :, None, None, None]
    wbank = wbank.transpose(0, 3, 4, 1, 2).reshape(K, taps, C_out, C_in)
    wbank = wbank.astype(jnp.bfloat16)                        # (K, 9, Cout, Cin)
    bbank = (params["bias"] * scale[None, :]).reshape(K, C_out, 1)

    # --- column-boundary masks for the kw=-1 / kw=+1 taps (tiles start on row
    # boundaries, so the pattern is identical for every tile).
    col = jnp.arange(T, dtype=jnp.int32) % W2
    lmask = (col > 0).astype(jnp.bfloat16).reshape(1, T)
    rmask = (col < W2 - 1).astype(jnp.bfloat16).reshape(1, T)

    kernel = functools.partial(_up_dconv_kernel, K=K, W2=W2, T=T, HALO=HALO)

    # --- scheduler / VMEM hints
    flops = 2 * B * C_out * taps * C_in * HW2 + 2 * B * K * taps * C_out * C_in
    bytes_accessed = (x_chunks.size * 2 + wbank.size * 2 + bbank.size * 4
                      + shift.size * 4 + att.size * 4 + 2 * T * 2
                      + B * C_out * HW2 * 4)
    block_bytes = (C_in * chunk * 2 + K * taps * C_out * C_in * 2 + K * C_out * 4
                   + C_out * 4 + 2 * T * 2 + C_out * T * 4)
    scratch_bytes = taps * C_out * C_in * 2 + C_out * 4 + C_out * T * 4 + C_in * T * 2
    vmem_limit = int(min(64 * 2 ** 20,
                         max(32 * 2 ** 20, 3 * (2 * block_bytes + scratch_bytes))))

    out = pl.pallas_call(
        kernel,
        out_shape=jax.ShapeDtypeStruct((B, C_out, HW2), jnp.float32),
        grid=(B, n_t),
        in_specs=[
            # softmax attention: tiny, scalar-indexed -> SMEM.
            pl.BlockSpec(memory_space=pltpu.MemorySpace.SMEM),
            # streamed activation chunk for (b, t).
            pl.BlockSpec((1, 1, C_in, chunk), lambda b, t: (b, t, 0, 0)),
            # grid-invariant expert banks / BN params (fetched once, revisited
            # blocks are not re-DMA'd).  On v7x (64 MiB VMEM) these could also
            # use pipeline_mode=pl.Buffered(1) to avoid double-buffering.
            pl.BlockSpec((K, taps, C_out, C_in), lambda b, t: (0, 0, 0, 0)),
            pl.BlockSpec((K, C_out, 1), lambda b, t: (0, 0, 0)),
            pl.BlockSpec((C_out, 1), lambda b, t: (0, 0)),
            pl.BlockSpec((1, T), lambda b, t: (0, 0)),
            pl.BlockSpec((1, T), lambda b, t: (0, 0)),
        ],
        out_specs=pl.BlockSpec((1, C_out, T), lambda b, t: (b, 0, t)),
        scratch_shapes=[
            pltpu.VMEM((taps, C_out, C_in), jnp.bfloat16),    # aggregated weights
            pltpu.VMEM((C_out, 1), jnp.float32),              # aggregated bias+shift
        ],
        compiler_params=pltpu.CompilerParams(
            dimension_semantics=("parallel", "arbitrary"),
            vmem_limit_bytes=vmem_limit),
        cost_estimate=pl.CostEstimate(flops=flops, transcendentals=0,
                                      bytes_accessed=bytes_accessed),
    )(att, x_chunks, wbank, bbank, shift, lmask, rmask)

    return out.reshape(B, C_out, H2, W2)


def reference(x, params, temperature=34):
    """Independent pure-JAX reference (f32, lax.conv with HIGHEST precision)."""
    B, C_in, H, W = x.shape
    K, C_out, _, KH, KW = params["weight"].shape
    x_up = jnp.repeat(jnp.repeat(x, 2, axis=2), 2, axis=3)
    pooled = x_up.mean(axis=(2, 3))
    hdn = jax.nn.relu(pooled @ params["w1"].T)
    logits = hdn @ params["w2"].T + params["b2"]
    att = jax.nn.softmax(logits / temperature, axis=1)
    agg_w = jnp.einsum("bk,koihw->boihw", att, params["weight"])
    agg_b = att @ params["bias"]
    outs = []
    for b in range(B):
        o = lax.conv_general_dilated(
            x_up[b:b + 1], agg_w[b], (1, 1), ((1, 1), (1, 1)),
            dimension_numbers=("NCHW", "OIHW", "NCHW"),
            precision=lax.Precision.HIGHEST)
        outs.append(o + agg_b[b][None, :, None, None])
    out = jnp.concatenate(outs, axis=0)
    inv_std = 1.0 / jnp.sqrt(params["bn_var"] + params["bn_eps"])
    out = ((out - params["bn_mean"][None, :, None, None])
           * (params["bn_gamma"] * inv_std)[None, :, None, None]
           + params["bn_beta"][None, :, None, None])
    return jnp.maximum(out, 0.0)


if __name__ == "__main__":
    key = jax.random.PRNGKey(0)
    kx, kp = jax.random.split(key)

    B, ch_in, ch_out, H, W = 2, 4, 8, 16, 16
    x = jax.random.normal(kx, (B, ch_in, H, W), jnp.float32)
    params = init_params(kp, ch_in, ch_out)

    out = jax.block_until_ready(up_conv_dconv(x, params))
    assert out.shape == (B, ch_out, 2 * H, 2 * W), out.shape

    ref = jax.block_until_ready(reference(x, params))
    max_err = float(jnp.max(jnp.abs(out - ref)))
    # bf16 matmul operands (f32 accumulation) vs an f32/HIGHEST reference:
    # use a correspondingly looser tolerance.
    if not jnp.allclose(out, ref, atol=5e-2, rtol=5e-2):
        raise AssertionError(f"kernel mismatch vs reference, max abs err {max_err:e}")

    print("KERNEL_OK")
</pallas_src>

<mosaic_0001>
module attributes {stable_mosaic.version = 11 : i64} {
  func.func @_up_dconv_kernel(%arg0: i32, %arg1: i32, %arg2: memref<2x4xf32, #tpu.memory_space<smem>>, %arg3: memref<1x1x4x578xbf16, #tpu.memory_space<vmem>>, %arg4: memref<4x9x8x4xbf16, #tpu.memory_space<vmem>>, %arg5: memref<4x8x1xf32, #tpu.memory_space<vmem>>, %arg6: memref<8x1xf32, #tpu.memory_space<vmem>>, %arg7: memref<1x512xbf16, #tpu.memory_space<vmem>>, %arg8: memref<1x512xbf16, #tpu.memory_space<vmem>>, %arg9: memref<1x8x512xf32, #tpu.memory_space<vmem>>, %arg10: memref<9x8x4xbf16, #tpu.memory_space<vmem>>, %arg11: memref<8x1xf32, #tpu.memory_space<vmem>>) attributes {dimension_semantics = [#tpu.dimension_semantics<parallel>, #tpu.dimension_semantics<arbitrary>], iteration_bounds = array<i64: 2, 2>, scalar_prefetch = 0 : i64, scratch_operands = 2 : i64, tpu.core_type = #tpu.core_type<tc>, window_params = [{transform_indices = @transform_0, window_bounds = array<i64: 2, 4>}, {transform_indices = @transform_1, window_bounds = array<i64: 1, 1, 4, 578>}, {pipeline_mode = #tpu.pipeline_mode<synchronous>, transform_indices = @transform_2, window_bounds = array<i64: 4, 9, 8, 4>}, {pipeline_mode = #tpu.pipeline_mode<synchronous>, transform_indices = @transform_3, window_bounds = array<i64: 4, 8, 1>}, {pipeline_mode = #tpu.pipeline_mode<synchronous>, transform_indices = @transform_4, window_bounds = array<i64: 8, 1>}, {pipeline_mode = #tpu.pipeline_mode<synchronous>, transform_indices = @transform_5, window_bounds = array<i64: 1, 512>}, {pipeline_mode = #tpu.pipeline_mode<synchronous>, transform_indices = @transform_6, window_bounds = array<i64: 1, 512>}, {transform_indices = @transform_7, window_bounds = array<i64: 1, 8, 512>}]} {
    %c0_i32 = arith.constant 0 : i32
    %0 = arith.cmpi eq, %arg1, %c0_i32 : i32
    %1 = arith.extui %0 : i1 to i32
    %c0_i32_0 = arith.constant 0 : i32
    %2 = arith.cmpi ne, %1, %c0_i32_0 : i32
    scf.if %2 {
      %79 = arith.index_cast %arg0 : i32 to index
      %c0_67 = arith.constant 0 : index
      %80 = memref.load %arg2[%79, %c0_67] : memref<2x4xf32, #tpu.memory_space<smem>>
      %c0_68 = arith.constant 0 : index
      %c0_69 = arith.constant 0 : index
      %c0_70 = arith.constant 0 : index
      %c0_71 = arith.constant 0 : index
      %81 = vector.load %arg4[%c0_68, %c0_69, %c0_70, %c0_71] : memref<4x9x8x4xbf16, #tpu.memory_space<vmem>>, vector<1x9x8x4xbf16>
      %82 = vector.shape_cast %81 : vector<1x9x8x4xbf16> to vector<9x8x4xbf16>
      %83 = arith.extf %82 : vector<9x8x4xbf16> to vector<9x8x4xf32>
      %84 = vector.broadcast %80 : f32 to vector<9x8x4xf32>
      %85 = arith.mulf %84, %83 : vector<9x8x4xf32>
      %86 = arith.index_cast %arg0 : i32 to index
      %c0_72 = arith.constant 0 : index
      %87 = memref.load %arg2[%86, %c0_72] : memref<2x4xf32, #tpu.memory_space<smem>>
      %c0_73 = arith.constant 0 : index
      %c0_74 = arith.constant 0 : index
      %c0_75 = arith.constant 0 : index
      %88 = vector.load %arg5[%c0_73, %c0_74, %c0_75] : memref<4x8x1xf32, #tpu.memory_space<vmem>>, vector<1x8x1xf32>
      %89 = vector.shape_cast %88 : vector<1x8x1xf32> to vector<8x1xf32>
      %90 = vector.broadcast %87 : f32 to vector<8x1xf32>
      %91 = arith.mulf %90, %89 : vector<8x1xf32>
      %92 = arith.index_cast %arg0 : i32 to index
      %c1_76 = arith.constant 1 : index
      %93 = memref.load %arg2[%92, %c1_76] : memref<2x4xf32, #tpu.memory_space<smem>>
      %c1_77 = arith.constant 1 : index
      %c0_78 = arith.constant 0 : index
      %c0_79 = arith.constant 0 : index
      %c0_80 = arith.constant 0 : index
      %94 = vector.load %arg4[%c1_77, %c0_78, %c0_79, %c0_80] : memref<4x9x8x4xbf16, #tpu.memory_space<vmem>>, vector<1x9x8x4xbf16>
      %95 = vector.shape_cast %94 : vector<1x9x8x4xbf16> to vector<9x8x4xbf16>
      %96 = arith.extf %95 : vector<9x8x4xbf16> to vector<9x8x4xf32>
      %97 = vector.broadcast %93 : f32 to vector<9x8x4xf32>
      %98 = arith.mulf %97, %96 : vector<9x8x4xf32>
      %99 = arith.addf %85, %98 : vector<9x8x4xf32>
      %c1_81 = arith.constant 1 : index
      %c0_82 = arith.constant 0 : index
      %c0_83 = arith.constant 0 : index
      %100 = vector.load %arg5[%c1_81, %c0_82, %c0_83] : memref<4x8x1xf32, #tpu.memory_space<vmem>>, vector<1x8x1xf32>
      %101 = vector.shape_cast %100 : vector<1x8x1xf32> to vector<8x1xf32>
      %102 = vector.broadcast %93 : f32 to vector<8x1xf32>
      %103 = arith.mulf %102, %101 : vector<8x1xf32>
      %104 = arith.addf %91, %103 : vector<8x1xf32>
      %105 = arith.index_cast %arg0 : i32 to index
      %c2_84 = arith.constant 2 : index
      %106 = memref.load %arg2[%105, %c2_84] : memref<2x4xf32, #tpu.memory_space<smem>>
      %c2_85 = arith.constant 2 : index
      %c0_86 = arith.constant 0 : index
      %c0_87 = arith.constant 0 : index
      %c0_88 = arith.constant 0 : index
      %107 = vector.load %arg4[%c2_85, %c0_86, %c0_87, %c0_88] : memref<4x9x8x4xbf16, #tpu.memory_space<vmem>>, vector<1x9x8x4xbf16>
      %108 = vector.shape_cast %107 : vector<1x9x8x4xbf16> to vector<9x8x4xbf16>
      %109 = arith.extf %108 : vector<9x8x4xbf16> to vector<9x8x4xf32>
      %110 = vector.broadcast %106 : f32 to vector<9x8x4xf32>
      %111 = arith.mulf %110, %109 : vector<9x8x4xf32>
      %112 = arith.addf %99, %111 : vector<9x8x4xf32>
      %c2_89 = arith.constant 2 : index
      %c0_90 = arith.constant 0 : index
      %c0_91 = arith.constant 0 : index
      %113 = vector.load %arg5[%c2_89, %c0_90, %c0_91] : memref<4x8x1xf32, #tpu.memory_space<vmem>>, vector<1x8x1xf32>
      %114 = vector.shape_cast %113 : vector<1x8x1xf32> to vector<8x1xf32>
      %115 = vector.broadcast %106 : f32 to vector<8x1xf32>
      %116 = arith.mulf %115, %114 : vector<8x1xf32>
      %117 = arith.addf %104, %116 : vector<8x1xf32>
      %118 = arith.index_cast %arg0 : i32 to index
      %c3_92 = arith.constant 3 : index
      %119 = memref.load %arg2[%118, %c3_92] : memref<2x4xf32, #tpu.memory_space<smem>>
      %c3_93 = arith.constant 3 : index
      %c0_94 = arith.constant 0 : index
      %c0_95 = arith.constant 0 : index
      %c0_96 = arith.constant 0 : index
      %120 = vector.load %arg4[%c3_93, %c0_94, %c0_95, %c0_96] : memref<4x9x8x4xbf16, #tpu.memory_space<vmem>>, vector<1x9x8x4xbf16>
      %121 = vector.shape_cast %120 : vector<1x9x8x4xbf16> to vector<9x8x4xbf16>
      %122 = arith.extf %121 : vector<9x8x4xbf16> to vector<9x8x4xf32>
      %123 = vector.broadcast %119 : f32 to vector<9x8x4xf32>
      %124 = arith.mulf %123, %122 : vector<9x8x4xf32>
      %125 = arith.addf %112, %124 : vector<9x8x4xf32>
      %c3_97 = arith.constant 3 : index
      %c0_98 = arith.constant 0 : index
      %c0_99 = arith.constant 0 : index
      %126 = vector.load %arg5[%c3_97, %c0_98, %c0_99] : memref<4x8x1xf32, #tpu.memory_space<vmem>>, vector<1x8x1xf32>
      %127 = vector.shape_cast %126 : vector<1x8x1xf32> to vector<8x1xf32>
      %128 = vector.broadcast %119 : f32 to vector<8x1xf32>
      %129 = arith.mulf %128, %127 : vector<8x1xf32>
      %130 = arith.addf %117, %129 : vector<8x1xf32>
      %131 = arith.truncf %125 : vector<9x8x4xf32> to vector<9x8x4xbf16>
      %c0_100 = arith.constant 0 : index
      %c0_101 = arith.constant 0 : index
      %c0_102 = arith.constant 0 : index
      %132 = vector.load %arg10[%c0_100, %c0_101, %c0_102] : memref<9x8x4xbf16, #tpu.memory_space<vmem>>, vector<9x8x4xbf16>
      tpu.vector_store %arg10[%c0_100, %c0_101, %c0_102], %131 {strides = array<i32>} : memref<9x8x4xbf16, #tpu.memory_space<vmem>>, vector<9x8x4xbf16>,
      %c0_103 = arith.constant 0 : index
      %c0_104 = arith.constant 0 : index
      %133 = vector.load %arg6[%c0_103, %c0_104] : memref<8x1xf32, #tpu.memory_space<vmem>>, vector<8x1xf32>
      %134 = arith.addf %130, %133 : vector<8x1xf32>
      %c0_105 = arith.constant 0 : index
      %c0_106 = arith.constant 0 : index
      %135 = vector.load %arg11[%c0_105, %c0_106] : memref<8x1xf32, #tpu.memory_space<vmem>>, vector<8x1xf32>
      tpu.vector_store %arg11[%c0_105, %c0_106], %134 {strides = array<i32>} : memref<8x1xf32, #tpu.memory_space<vmem>>, vector<8x1xf32>,
    } else {
    }
    %c0 = arith.constant 0 : index
    %c0_1 = arith.constant 0 : index
    %3 = vector.load %arg7[%c0, %c0_1] : memref<1x512xbf16, #tpu.memory_space<vmem>>, vector<1x512xbf16>
    %c0_2 = arith.constant 0 : index
    %c0_3 = arith.constant 0 : index
    %4 = vector.load %arg8[%c0_2, %c0_3] : memref<1x512xbf16, #tpu.memory_space<vmem>>, vector<1x512xbf16>
    %c0_4 = arith.constant 0 : index
    %c0_5 = arith.constant 0 : index
    %5 = vector.load %arg11[%c0_4, %c0_5] : memref<8x1xf32, #tpu.memory_space<vmem>>, vector<8x1xf32>
    %6 = vector.shape_cast %5 : vector<8x1xf32> to vector<8x1xf32>
    %7 = vector.broadcast %6 : vector<8x1xf32> to vector<8x512xf32>
    %c0_6 = arith.constant 0 : index
    %c0_7 = arith.constant 0 : index
    %c0_8 = arith.constant 0 : index
    %c0_9 = arith.constant 0 : index
    %8 = vector.load %arg3[%c0_6, %c0_7, %c0_8, %c0_9] : memref<1x1x4x578xbf16, #tpu.memory_space<vmem>>, vector<1x1x4x512xbf16>
    %9 = vector.shape_cast %8 : vector<1x1x4x512xbf16> to vector<4x512xbf16>
    %10 = vector.broadcast %3 : vector<1x512xbf16> to vector<4x512xbf16>
    %11 = arith.mulf %9, %10 : vector<4x512xbf16>
    %c0_10 = arith.constant 0 : index
    %c0_11 = arith.constant 0 : index
    %c0_12 = arith.constant 0 : index
    %12 = vector.load %arg10[%c0_10, %c0_11, %c0_12] : memref<9x8x4xbf16, #tpu.memory_space<vmem>>, vector<1x8x4xbf16>
    %13 = vector.shape_cast %12 : vector<1x8x4xbf16> to vector<8x4xbf16>
    %cst = arith.constant dense<0.000000e+00> : vector<8x512xf32>
    %14 = tpu.matmul %13, %11, %cst {dimension_numbers = #tpu.dot_dimension_numbers<[1], [0], [0], [1], [0, 0, 1, 1], [], []>} : vector<8x4xbf16>, vector<4x512xbf16>, vector<8x512xf32> -> vector<8x512xf32>
    %15 = arith.addf %7, %14 : vector<8x512xf32>
    %c0_13 = arith.constant 0 : index
    %c0_14 = arith.constant 0 : index
    %c0_15 = arith.constant 0 : index
    %c1 = arith.constant 1 : index
    %16 = vector.load %arg3[%c0_13, %c0_14, %c0_15, %c1] : memref<1x1x4x578xbf16, #tpu.memory_space<vmem>>, vector<1x1x4x512xbf16>
    %17 = vector.shape_cast %16 : vector<1x1x4x512xbf16> to vector<4x512xbf16>
    %c1_16 = arith.constant 1 : index
    %c0_17 = arith.constant 0 : index
    %c0_18 = arith.constant 0 : index
    %18 = vector.load %arg10[%c1_16, %c0_17, %c0_18] : memref<9x8x4xbf16, #tpu.memory_space<vmem>>, vector<1x8x4xbf16>
    %19 = vector.shape_cast %18 : vector<1x8x4xbf16> to vector<8x4xbf16>
    %cst_19 = arith.constant dense<0.000000e+00> : vector<8x512xf32>
    %20 = tpu.matmul %19, %17, %cst_19 {dimension_numbers = #tpu.dot_dimension_numbers<[1], [0], [0], [1], [0, 0, 1, 1], [], []>} : vector<8x4xbf16>, vector<4x512xbf16>, vector<8x512xf32> -> vector<8x512xf32>
    %21 = arith.addf %15, %20 : vector<8x512xf32>
    %c0_20 = arith.constant 0 : index
    %c0_21 = arith.constant 0 : index
    %c0_22 = arith.constant 0 : index
    %c2 = arith.constant 2 : index
    %22 = vector.load %arg3[%c0_20, %c0_21, %c0_22, %c2] : memref<1x1x4x578xbf16, #tpu.memory_space<vmem>>, vector<1x1x4x512xbf16>
    %23 = vector.shape_cast %22 : vector<1x1x4x512xbf16> to vector<4x512xbf16>
    %24 = vector.broadcast %4 : vector<1x512xbf16> to vector<4x512xbf16>
    %25 = arith.mulf %23, %24 : vector<4x512xbf16>
    %c2_23 = arith.constant 2 : index
    %c0_24 = arith.constant 0 : index
    %c0_25 = arith.constant 0 : index
    %26 = vector.load %arg10[%c2_23, %c0_24, %c0_25] : memref<9x8x4xbf16, #tpu.memory_space<vmem>>, vector<1x8x4xbf16>
    %27 = vector.shape_cast %26 : vector<1x8x4xbf16> to vector<8x4xbf16>
    %cst_26 = arith.constant dense<0.000000e+00> : vector<8x512xf32>
    %28 = tpu.matmul %27, %25, %cst_26 {dimension_numbers = #tpu.dot_dimension_numbers<[1], [0], [0], [1], [0, 0, 1, 1], [], []>} : vector<8x4xbf16>, vector<4x512xbf16>, vector<8x512xf32> -> vector<8x512xf32>
    %29 = arith.addf %21, %28 : vector<8x512xf32>
    %c0_27 = arith.constant 0 : index
    %c0_28 = arith.constant 0 : index
    %c0_29 = arith.constant 0 : index
    %c32 = arith.constant 32 : index
    %30 = vector.load %arg3[%c0_27, %c0_28, %c0_29, %c32] : memref<1x1x4x578xbf16, #tpu.memory_space<vmem>>, vector<1x1x4x512xbf16>
    %31 = vector.shape_cast %30 : vector<1x1x4x512xbf16> to vector<4x512xbf16>
    %32 = vector.broadcast %3 : vector<1x512xbf16> to vector<4x512xbf16>
    %33 = arith.mulf %31, %32 : vector<4x512xbf16>
    %c3 = arith.constant 3 : index
    %c0_30 = arith.constant 0 : index
    %c0_31 = arith.constant 0 : index
    %34 = vector.load %arg10[%c3, %c0_30, %c0_31] : memref<9x8x4xbf16, #tpu.memory_space<vmem>>, vector<1x8x4xbf16>
    %35 = vector.shape_cast %34 : vector<1x8x4xbf16> to vector<8x4xbf16>
    %cst_32 = arith.constant dense<0.000000e+00> : vector<8x512xf32>
    %36 = tpu.matmul %35, %33, %cst_32 {dimension_numbers = #tpu.dot_dimension_numbers<[1], [0], [0], [1], [0, 0, 1, 1], [], []>} : vector<8x4xbf16>, vector<4x512xbf16>, vector<8x512xf32> -> vector<8x512xf32>
    %37 = arith.addf %29, %36 : vector<8x512xf32>
    %c0_33 = arith.constant 0 : index
    %c0_34 = arith.constant 0 : index
    %c0_35 = arith.constant 0 : index
    %c33 = arith.constant 33 : index
    %38 = vector.load %arg3[%c0_33, %c0_34, %c0_35, %c33] : memref<1x1x4x578xbf16, #tpu.memory_space<vmem>>, vector<1x1x4x512xbf16>
    %39 = vector.shape_cast %38 : vector<1x1x4x512xbf16> to vector<4x512xbf16>
    %c4 = arith.constant 4 : index
    %c0_36 = arith.constant 0 : index
    %c0_37 = arith.constant 0 : index
    %40 = vector.load %arg10[%c4, %c0_36, %c0_37] : memref<9x8x4xbf16, #tpu.memory_space<vmem>>, vector<1x8x4xbf16>
    %41 = vector.shape_cast %40 : vector<1x8x4xbf16> to vector<8x4xbf16>
    %cst_38 = arith.constant dense<0.000000e+00> : vector<8x512xf32>
    %42 = tpu.matmul %41, %39, %cst_38 {dimension_numbers = #tpu.dot_dimension_numbers<[1], [0], [0], [1], [0, 0, 1, 1], [], []>} : vector<8x4xbf16>, vector<4x512xbf16>, vector<8x512xf32> -> vector<8x512xf32>
    %43 = arith.addf %37, %42 : vector<8x512xf32>
    %c0_39 = arith.constant 0 : index
    %c0_40 = arith.constant 0 : index
    %c0_41 = arith.constant 0 : index
    %c34 = arith.constant 34 : index
    %44 = vector.load %arg3[%c0_39, %c0_40, %c0_41, %c34] : memref<1x1x4x578xbf16, #tpu.memory_space<vmem>>, vector<1x1x4x512xbf16>
    %45 = vector.shape_cast %44 : vector<1x1x4x512xbf16> to vector<4x512xbf16>
    %46 = vector.broadcast %4 : vector<1x512xbf16> to vector<4x512xbf16>
    %47 = arith.mulf %45, %46 : vector<4x512xbf16>
    %c5 = arith.constant 5 : index
    %c0_42 = arith.constant 0 : index
    %c0_43 = arith.constant 0 : index
    %48 = vector.load %arg10[%c5, %c0_42, %c0_43] : memref<9x8x4xbf16, #tpu.memory_space<vmem>>, vector<1x8x4xbf16>
    %49 = vector.shape_cast %48 : vector<1x8x4xbf16> to vector<8x4xbf16>
    %cst_44 = arith.constant dense<0.000000e+00> : vector<8x512xf32>
    %50 = tpu.matmul %49, %47, %cst_44 {dimension_numbers = #tpu.dot_dimension_numbers<[1], [0], [0], [1], [0, 0, 1, 1], [], []>} : vector<8x4xbf16>, vector<4x512xbf16>, vector<8x512xf32> -> vector<8x512xf32>
    %51 = arith.addf %43, %50 : vector<8x512xf32>
    %c0_45 = arith.constant 0 : index
    %c0_46 = arith.constant 0 : index
    %c0_47 = arith.constant 0 : index
    %c64 = arith.constant 64 : index
    %52 = vector.load %arg3[%c0_45, %c0_46, %c0_47, %c64] : memref<1x1x4x578xbf16, #tpu.memory_space<vmem>>, vector<1x1x4x512xbf16>
    %53 = vector.shape_cast %52 : vector<1x1x4x512xbf16> to vector<4x512xbf16>
    %54 = vector.broadcast %3 : vector<1x512xbf16> to vector<4x512xbf16>
    %55 = arith.mulf %53, %54 : vector<4x512xbf16>
    %c6 = arith.constant 6 : index
    %c0_48 = arith.constant 0 : index
    %c0_49 = arith.constant 0 : index
    %56 = vector.load %arg10[%c6, %c0_48, %c0_49] : memref<9x8x4xbf16, #tpu.memory_space<vmem>>, vector<1x8x4xbf16>
    %57 = vector.shape_cast %56 : vector<1x8x4xbf16> to vector<8x4xbf16>
    %cst_50 = arith.constant dense<0.000000e+00> : vector<8x512xf32>
    %58 = tpu.matmul %57, %55, %cst_50 {dimension_numbers = #tpu.dot_dimension_numbers<[1], [0], [0], [1], [0, 0, 1, 1], [], []>} : vector<8x4xbf16>, vector<4x512xbf16>, vector<8x512xf32> -> vector<8x512xf32>
    %59 = arith.addf %51, %58 : vector<8x512xf32>
    %c0_51 = arith.constant 0 : index
    %c0_52 = arith.constant 0 : index
    %c0_53 = arith.constant 0 : index
    %c65 = arith.constant 65 : index
    %60 = vector.load %arg3[%c0_51, %c0_52, %c0_53, %c65] : memref<1x1x4x578xbf16, #tpu.memory_space<vmem>>, vector<1x1x4x512xbf16>
    %61 = vector.shape_cast %60 : vector<1x1x4x512xbf16> to vector<4x512xbf16>
    %c7 = arith.constant 7 : index
    %c0_54 = arith.constant 0 : index
    %c0_55 = arith.constant 0 : index
    %62 = vector.load %arg10[%c7, %c0_54, %c0_55] : memref<9x8x4xbf16, #tpu.memory_space<vmem>>, vector<1x8x4xbf16>
    %63 = vector.shape_cast %62 : vector<1x8x4xbf16> to vector<8x4xbf16>
    %cst_56 = arith.constant dense<0.000000e+00> : vector<8x512xf32>
    %64 = tpu.matmul %63, %61, %cst_56 {dimension_numbers = #tpu.dot_dimension_numbers<[1], [0], [0], [1], [0, 0, 1, 1], [], []>} : vector<8x4xbf16>, vector<4x512xbf16>, vector<8x512xf32> -> vector<8x512xf32>
    %65 = arith.addf %59, %64 : vector<8x512xf32>
    %c0_57 = arith.constant 0 : index
    %c0_58 = arith.constant 0 : index
    %c0_59 = arith.constant 0 : index
    %c66 = arith.constant 66 : index
    %66 = vector.load %arg3[%c0_57, %c0_58, %c0_59, %c66] : memref<1x1x4x578xbf16, #tpu.memory_space<vmem>>, vector<1x1x4x512xbf16>
    %67 = vector.shape_cast %66 : vector<1x1x4x512xbf16> to vector<4x512xbf16>
    %68 = vector.broadcast %4 : vector<1x512xbf16> to vector<4x512xbf16>
    %69 = arith.mulf %67, %68 : vector<4x512xbf16>
    %c8 = arith.constant 8 : index
    %c0_60 = arith.constant 0 : index
    %c0_61 = arith.constant 0 : index
    %70 = vector.load %arg10[%c8, %c0_60, %c0_61] : memref<9x8x4xbf16, #tpu.memory_space<vmem>>, vector<1x8x4xbf16>
    %71 = vector.shape_cast %70 : vector<1x8x4xbf16> to vector<8x4xbf16>
    %cst_62 = arith.constant dense<0.000000e+00> : vector<8x512xf32>
    %72 = tpu.matmul %71, %69, %cst_62 {dimension_numbers = #tpu.dot_dimension_numbers<[1], [0], [0], [1], [0, 0, 1, 1], [], []>} : vector<8x4xbf16>, vector<4x512xbf16>, vector<8x512xf32> -> vector<8x512xf32>
    %73 = arith.addf %65, %72 : vector<8x512xf32>
    %cst_63 = arith.constant 0.000000e+00 : f32
    %74 = vector.broadcast %cst_63 : f32 to vector<8x512xf32>
    %75 = arith.maximumf %73, %74 : vector<8x512xf32>
    %c0_64 = arith.constant 0 : index
    %c0_65 = arith.constant 0 : index
    %c0_66 = arith.constant 0 : index
    %76 = vector.load %arg9[%c0_64, %c0_65, %c0_66] : memref<1x8x512xf32, #tpu.memory_space<vmem>>, vector<1x8x512xf32>
    %77 = vector.shape_cast %76 : vector<1x8x512xf32> to vector<8x512xf32>
    %78 = vector.shape_cast %75 : vector<8x512xf32> to vector<1x8x512xf32>
    tpu.vector_store %arg9[%c0_64, %c0_65, %c0_66], %78 {strides = array<i32>} : memref<1x8x512xf32, #tpu.memory_space<vmem>>, vector<1x8x512xf32>,
    return
  }
  func.func @transform_0(%arg0: i32, %arg1: i32) -> (i32, i32) {
    %c0_i32 = arith.constant 0 : i32
    %c0_i32_0 = arith.constant 0 : i32
    %c0_i32_1 = arith.constant 0 : i32
    return %c0_i32, %c0_i32_0 : i32, i32
  }
  func.func @transform_1(%arg0: i32, %arg1: i32) -> (i32, i32, i32, i32) {
    %c0_i32 = arith.constant 0 : i32
    %c0_i32_0 = arith.constant 0 : i32
    %c0_i32_1 = arith.constant 0 : i32
    return %arg0, %arg1, %c0_i32, %c0_i32_0 : i32, i32, i32, i32
  }
  func.func @transform_2(%arg0: i32, %arg1: i32) -> (i32, i32, i32, i32) {
    %c0_i32 = arith.constant 0 : i32
    %c0_i32_0 = arith.constant 0 : i32
    %c0_i32_1 = arith.constant 0 : i32
    %c0_i32_2 = arith.constant 0 : i32
    %c0_i32_3 = arith.constant 0 : i32
    return %c0_i32, %c0_i32_0, %c0_i32_1, %c0_i32_2 : i32, i32, i32, i32
  }
  func.func @transform_3(%arg0: i32, %arg1: i32) -> (i32, i32, i32) {
    %c0_i32 = arith.constant 0 : i32
    %c0_i32_0 = arith.constant 0 : i32
    %c0_i32_1 = arith.constant 0 : i32
    %c0_i32_2 = arith.constant 0 : i32
    return %c0_i32, %c0_i32_0, %c0_i32_1 : i32, i32, i32
  }
  func.func @transform_4(%arg0: i32, %arg1: i32) -> (i32, i32) {
    %c0_i32 = arith.constant 0 : i32
    %c0_i32_0 = arith.constant 0 : i32
    %c0_i32_1 = arith.constant 0 : i32
    return %c0_i32, %c0_i32_0 : i32, i32
  }
  func.func @transform_5(%arg0: i32, %arg1: i32) -> (i32, i32) {
    %c0_i32 = arith.constant 0 : i32
    %c0_i32_0 = arith.constant 0 : i32
    %c0_i32_1 = arith.constant 0 : i32
    return %c0_i32, %c0_i32_0 : i32, i32
  }
  func.func @transform_6(%arg0: i32, %arg1: i32) -> (i32, i32) {
    %c0_i32 = arith.constant 0 : i32
    %c0_i32_0 = arith.constant 0 : i32
    %c0_i32_1 = arith.constant 0 : i32
    return %c0_i32, %c0_i32_0 : i32, i32
  }
  func.func @transform_7(%arg0: i32, %arg1: i32) -> (i32, i32, i32) {
    %c0_i32 = arith.constant 0 : i32
    %c0_i32_0 = arith.constant 0 : i32
    return %arg0, %c0_i32, %arg1 : i32, i32, i32
  }
}

</mosaic_0001>

<bundles_post_ra>
// kernel: tpu_custom_call.1
= control target key start
LH: loop header
LB: loop body
LE: loop exit
PB: predicated region body
PF: predicated region fallthrough
CT: control target
= control target key end

     0   :  { %s2827_s0 = inlined_call_operand.vmem [shape: f32[2,4], index: 0, kind: input, shape index: {}]   ;;  %s2828_s1 = inlined_call_operand.vmem [shape: bf16[2,2,4,578], index: 1, kind: input, shape index: {}]   ;;  %s2829_s2 = inlined_call_operand.vmem [shape: bf16[4,9,8,4], index: 2, kind: input, shape index: {}]   ;;  %s2830_s3 = inlined_call_operand.vmem [shape: f32[4,8,1], index: 3, kind: input, shape index: {}]   ;;  %s2831_s4 = inlined_call_operand.vmem [shape: f32[8,1], index: 4, kind: input, shape index: {}]   ;;  %s2832_s5 = inlined_call_operand.vmem [shape: bf16[1,512], index: 5, kind: input, shape index: {}]   ;;  %s2833_s6 = inlined_call_operand.vmem [shape: bf16[1,512], index: 6, kind: input, shape index: {}]   ;;  %s2834_s7 = inlined_call_operand.hbm [shape: f32[2,8,1024], index: 7, kind: output, shape index: {}]  }
   0x1   :  { %2840 = sst [smem:[#allocation14_spill]] %s2827_s0 }
   0x2   :  { %2841 = sst [smem:[#allocation15_spill]] %s2828_s1 }
   0x3   :  { %12 = vsyncpa [#allocation6], 0 }
   0x4   :  { %13 = vsyncpa [#allocation5], 0 }
   0x5   :  { %15 = vsyncpa [#allocation5 + $0x1], 0  ;;  %s2254_s24 = smov 0   ;;  %s2256_s25 = smov 0  }
   0x6   :  { %s2258_s26 = smov 0   ;;  %s2260_s27 = smov 0  }
   0x7   :  { %s2262_s28 = smov 0   ;;  %s2264_s29 = smov 0  }
   0x8   :  { %s2266_s30 = smov 0   ;;  %s2268_s8 = smov 0  }
   0x9 LB: > { %2842 = sst [smem:[#allocation10_spill]] %s2190_s29  ;;  %s1800_s9 = sadd.s32 4294967295, %s2198_s8   ;;  %s2198_s8 = sphi %s2268_s8, %s21_s8   ;;  %s2194_s30 = sphi %s2266_s30, %s2854_s30   ;;  %s2190_s29 = sphi %s2264_s29, %s2853_s29   ;;  %s2186_s28 = sphi %s2262_s28, %s2852_s28   ;;  %s2182_s27 = sphi %s2260_s27, %s2851_s27   ;;  %s2178_s26 = sphi %s2258_s26, %s2857_s26   ;;  %s2174_s25 = sphi %s2256_s25, %s2856_s25   ;;  %s2170_s24 = sphi %s2254_s24, %s2855_s24  }
   0xa   : > { %2843 = sst [smem:[#allocation11_spill]] %s2194_s30  ;;  %s1801_s10 = sadd.s32 4294967294, %s2198_s8  }
   0xb   : > { %s30_s11 = sadd.s32 1, %s2190_s29  ;;  %s33_s12 = sadd.s32 1, %s2194_s30 }
   0xc   : > { %p31_p0 = scmp.ge.s32.totalorder %s30_s11, 2  ;;  %s196_s13 = sadd.s32 1, %s2178_s26 }
   0xd   : > { %p206_p1 = scmp.ne.s32.totalorder %s2178_s26, %s2174_s25  ;;  %p207_p2 = scmp.eq.s32.totalorder %s1800_s9, 3 }
   0xe   : > { %s2859_s11 = smov (%p31_p0, %s30_s11), 0  ;;  %s2861_s12 = smov (!%p31_p0, %s33_s12), %s2194_s30 }
   0xf   : > { %2844 = sst [smem:[#allocation12_spill]] %s2859_s11  ;;  %s192_s14 = ssub.s32 %s2190_s29, %s2859_s11 }
  0x10   : > { %p2306_p3 = por %p207_p2, %p206_p1  ;;  %p35_p4 = scmp.ge.s32.totalorder %s2861_s12, 2 }
  0x11   : > { %p212_p5 = scmp.ne.s32.totalorder %s2174_s25, %s2170_s24  ;;  %p213_p6 = scmp.eq.s32.totalorder %s1801_s10, 3 }
  0x12   : > { %p1802_p7 = scmp.ge.s32.totalorder %s2198_s8, 1  ;;  %s2863_s12 = smov (%p35_p4, %s2861_s12), 0 }
  0x13   : > { %2846 = sst [smem:[#allocation13_spill]] %s2863_s12  ;;  %p2315_p8 = por %p213_p6, %p212_p5 }
  0x14   : > { %p220_p9 = scmp.lt.s32.totalorder %s2198_s8, 5  ;;  %s191_s17 = ssub.s32 %s2194_s30, %s2863_s12 }
  0x15   : > { %s193_s18 = sor.u32 %s192_s14, %s191_s17  ;;  %p1978_p12 = scmp.eq.s32.totalorder %s1800_s9, 0 }
  0x16   : > { %p221_p10 = pnand %p1802_p7, %p220_p9  ;;  %p194_p11 = scmp.eq.s32.totalorder %s193_s18, 0 }
  0x17   : > { %s2848_s0 = sld [smem:[#allocation14_spill]]  ;;  %s2200_s23 = smov [#allocation4]  }
  0x18   : > { %p1970_p13 = pneg %p221_p10 }
  0x19   : > { %s2326_s22 = scalar_select %p194_p11, %s2178_s26, %s196_s13  }
  0x1a   : > { %p1971_p0 = pnand %p1978_p12, %p1970_p13  ;;  %272 = sbr.rel (%p221_p10) target bundleno = 711 (0x2c7), region = 48 }
  0x1d   : > { %s232_s21 = sshll.u32 %s2848_s0, 4  ;;  %s233_s21 = int_to_ptr.vmem [resolvable:$true] %s232_s21 }
  0x1e   : > { %1973 = dma.vmem_to_smem (!%p1971_p0), %s233_s21, 32, %s2200_s23, [#allocation6]  }
  0x1f   : > { %2161 = dma.done.wait (%p1978_p12), [#allocation6], 32  }
  0x20   : > { %2163 = vsyncadd (%p1978_p12), [#allocation6], 4294967264 }
  0x21   : > { %279 = sfence }
  0x22   : > { %s2837_s9 = sand.u32 1, %s2174_s25   ;;  %p310_p1 = scmp.lt.s32.totalorder %s2186_s28, 1 }
  0x23   : > { %s1807_s10 = sshll.u32 %s2837_s9, 5  ;;  %p312_p2 = scmp.lt.s32.totalorder %s2182_s27, 1 }
  0x24   : > { %s311_s13 = scalar_select %p310_p1, %s2186_s28, 1 }
  0x25   : > { %s313_s14 = scalar_select %p312_p2, %s2182_s27, 1 }
  0x26   : > { %s1963_s17 = smul.u32 10, %s311_s13  ;;  %s2849_s1 = sld [smem:[#allocation15_spill]] }
  0x27   : > { %s1962_s18 = smul.u32 5, %s313_s14  ;;  %s2340_s12 = scalar_lea.vmem [#allocation7], %s1807_s10 }
  0x28   : > { %p1809_p4 = scmp.ne.s32.totalorder %s2182_s27, 0 }
  0x29   : > { %s316_s19 = sadd.s32 %s1963_s17, %s1962_s18  ;;  %s2344_s11 = sshll.u32 (!%p1809_p4), %s2186_s28, 7 }
  0x2a   : > { %s1808_s20 = sshll.u32 %s316_s19, 1  ;;  %324 = sbr.rel (%p1809_p4) target bundleno = 85 (0x55), region = 56 }
  0x2b   : > { %s2358_s18 = sld [smem:[#allocation4 + %s2344_s11]] (!%p1809_p4)  ;;  %s357_s19 = sadd.s32 (!%p1809_p4), 1, %s2344_s11 }
  0x2c   : > { %s2338_s0 = scalar_lea.vmem %s2849_s1, %s1808_s20  ;;  %s2373_s14 = sld [smem:[#allocation4 + %s357_s19]] (!%p1809_p4) }
  0x2d   : > { %s401_s10 = sadd.s32 (!%p1809_p4), 2, %s2344_s11  ;;  %s445_s23 = sadd.s32 (!%p1809_p4), 3, %s2344_s11 }
  0x2e   : > { %s2386_s19 = sld [smem:[#allocation4 + %s401_s10]] (!%p1809_p4) }
  0x2f   : > { %v1884_v0 = vld [vmem:[%s2829_s2] sm:$0xff]   ;;  %v1954_v2 = vld [vmem:[%s2829_s2 + $0x48] sm:$0xff]   ;;  %v1958_v9 = vld [vmem:[%s2829_s2 + $0x70] sm:$0xff]   ;;  %s2400_s10 = sld [smem:[#allocation4 + %s445_s23]]  ;;  %vm498_vm0 = vcmask 27648   ;;  %vm510_vm1 = vcmask 7168  }
  0x30   : > { %v2352_v1 = vld [vmem:[%s2829_s2 + $0x20] sm:$0xff]   ;;  %v1885_v3 = vunpack.c.l.bf16 %v1884_v0  ;;  %v1917_v5 = vunpack.c.l.bf16 %v1954_v2  ;;  %v2365_v6 = vld [vmem:[%s2829_s2 + $0x68] sm:$0xff]   ;;  %v1886_v7 = vunpack.c.h.bf16 %v1884_v0  ;;  %v1918_v12 = vunpack.c.h.bf16 %v1954_v2  ;;  %v1955_v15 = vld [vmem:[%s2829_s2 + $0x50] sm:$0xff]  }
  0x31   : > { %v369_v4 = vunpack.c.h.bf16 %v2352_v1  ;;  %v1950_v8 = vld [vmem:[%s2829_s2 + $0x28] sm:$0xff]   ;;  %v457_v10 = vunpack.c.h.bf16 %v2365_v6  ;;  %v1933_v13 = vunpack.c.l.bf16 %v1958_v9  ;;  %v1951_v16 = vld [vmem:[%s2829_s2 + $0x30] sm:$0xff]   ;;  %v1921_v19 = vunpack.c.l.bf16 %v1955_v15  ;;  %v1959_v21 = vld [vmem:[%s2829_s2 + $0x78] sm:$0xff]  }
  0x32   : > { %v1901_v11 = vunpack.c.l.bf16 %v1950_v8  ;;  %v1947_v14 = vld [vmem:[%s2829_s2 + $0x8] sm:$0xff]   ;;  %v1902_v18 = vunpack.c.h.bf16 %v1950_v8  ;;  %v1934_v20 = vunpack.c.h.bf16 %v1958_v9  ;;  %v1948_v22 = vld [vmem:[%s2829_s2 + $0x10] sm:$0xff]   ;;  %v2398_v23 = vld [vmem:[%s2829_s2 + $0x58] sm:$0xff]   ;;  %v1905_v25 = vunpack.c.l.bf16 %v1951_v16 }
  0x33   : > { %v1889_v17 = vunpack.c.l.bf16 %v1947_v14  ;;  %v1890_v24 = vunpack.c.h.bf16 %v1947_v14  ;;  %v1922_v26 = vunpack.c.h.bf16 %v1955_v15  ;;  %v1937_v27 = vunpack.c.l.bf16 %v1959_v21  ;;  %v2405_v28 = vld [vmem:[%s2829_s2 + $0x38] sm:$0xff]   ;;  %v2410_v29 = vld [vmem:[%s2829_s2 + $0x80] sm:$0xff]  }
  0x34   : > { %v2415_v30 = vld [vmem:[%s2829_s2 + $0x18] sm:$0xff]   ;;  %v1893_v31 = vunpack.c.l.bf16 %v1948_v22  ;;  %v1906_v32 = vunpack.c.h.bf16 %v1951_v16  ;;  %v1925_v33 = vunpack.c.l.bf16 %v2398_v23  ;;  %v1938_v34 = vunpack.c.h.bf16 %v1959_v21  ;;  %v2421_v35 = vld [vmem:[%s2829_s2 + $0x60] sm:$0xff]  }
  0x35   : > { %v1894_v36 = vunpack.c.h.bf16 %v1948_v22  ;;  %v1909_v37 = vunpack.c.l.bf16 %v2405_v28  ;;  %v1926_v38 = vunpack.c.h.bf16 %v2398_v23  ;;  %v1941_v39 = vunpack.c.l.bf16 %v2410_v29 }
  0x36   : > { %v2427_v40 = vstv %s2358_s18  ;;  %v1897_v41 = vunpack.c.l.bf16 %v2415_v30  ;;  %v1910_v42 = vunpack.c.h.bf16 %v2405_v28  ;;  %v1929_v43 = vunpack.c.l.bf16 %v2421_v35 }
  0x37   : > { %v346_v44 = vmul.f32 %v1885_v3, %v2427_v40  ;;  %v2434_v45 = vstv %s2373_s14  ;;  %v347_v46 = vmul.f32 %v1886_v7, %v2427_v40  ;;  %v348_v47 = vmul.f32 %v1889_v17, %v2427_v40 }
  0x38   : > { %v379_v48 = vmul.f32 %v2434_v45, %v369_v4  ;;  %v2440_v49 = vstv %s2386_s19  ;;  %v380_v50 = vmul.f32 %v1901_v11, %v2434_v45  ;;  %v381_v51 = vmul.f32 %v1902_v18, %v2434_v45 }
  0x39   : > { %v423_v52 = vmul.f32 %v1917_v5, %v2440_v49  ;;  %v2446_v53 = vstv %s2400_s10  ;;  %v424_v54 = vmul.f32 %v1918_v12, %v2440_v49  ;;  %v425_v55 = vmul.f32 %v1921_v19, %v2440_v49 }
  0x3a   : > { %v388_v56 = vadd.f32 %v379_v48, %v346_v44  ;;  %v467_v57 = vmul.f32 %v2446_v53, %v457_v10  ;;  %v389_v58 = vadd.f32 %v380_v50, %v347_v46  ;;  %v468_v59 = vmul.f32 %v1933_v13, %v2446_v53 }
  0x3b   : > { %v390_v60 = vadd.f32 %v381_v51, %v348_v47  ;;  %v469_v61 = vmul.f32 %v1934_v20, %v2446_v53  ;;  %v349_v62 = vmul.f32 %v1890_v24, %v2427_v40  ;;  %v382_v63 = vmul.f32 %v1905_v25, %v2434_v45 }
  0x3c   : > { %v432_v0 = vadd.f32 %v423_v52, %v388_v56  ;;  %v433_v2 = vadd.f32 %v424_v54, %v389_v58  ;;  %v426_v3 = vmul.f32 %v1922_v26, %v2440_v49  ;;  %v470_v4 = vmul.f32 %v1937_v27, %v2446_v53  ;;  %v1953_v26 = vld [vmem:[%s2829_s2 + $0x40] sm:$0xff]  }
  0x3d   : > { %v434_v5 = vadd.f32 %v425_v55, %v390_v60  ;;  %v391_v7 = vadd.f32 %v382_v63, %v349_v62  ;;  %v350_v8 = vmul.f32 %v1893_v31, %v2427_v40  ;;  %v383_v9 = vmul.f32 %v1906_v32, %v2434_v45  ;;  %v355_v52 = vld [vmem:[%s2830_s3] sm:$0xff]  ;;  %v1830_v62 = vld [vmem:[%s2830_s3 + $0x10] sm:$0xff] }
  0x3e   : > { %v476_v10 = vadd.f32 %v467_v57, %v432_v0  ;;  %v477_v11 = vadd.f32 %v468_v59, %v433_v2  ;;  %v427_v12 = vmul.f32 %v1925_v33, %v2440_v49  ;;  %v471_v13 = vmul.f32 %v1938_v34, %v2446_v53  ;;  %v1961_v33 = vld [vmem:[%s2829_s2 + $0x88] sm:$0xff]   ;;  %v1840_v2 = vld [vmem:[%s2830_s3 + $0x18] sm:$0xff] }
  0x3f   : > { %v478_v14 = vadd.f32 %v469_v61, %v434_v5  ;;  %v435_v15 = vadd.f32 %v426_v3, %v391_v7  ;;  %v392_v16 = vadd.f32 %v383_v9, %v350_v8  ;;  %v351_v17 = vmul.f32 %v1894_v36, %v2427_v40  ;;  %v1820_v57 = vld [vmem:[%s2830_s3 + $0x8] sm:$0xff] }
  0x40   : > { %v489_v18 = vpack.c.bf16 %v476_v10, %v476_v10  ;;  %v490_v19 = vpack.c.bf16 %v477_v11, %v477_v11  ;;  %v384_v20 = vmul.f32 %v1909_v37, %v2434_v45  ;;  %v428_v21 = vmul.f32 %v1926_v38, %v2440_v49 }
  0x41   : > { %v491_v22 = vpack.c.bf16 %v478_v14, %v478_v14  ;;  %v479_v23 = vadd.f32 %v470_v4, %v435_v15  ;;  %v436_v24 = vadd.f32 %v427_v12, %v392_v16  ;;  %v472_v25 = vmul.f32 %v1941_v39, %v2446_v53  ;;  %v508_v16 = vld [vmem:[%s2831_s4] sm:$0xff] }
  0x42   : > { %499 = vst.msk [vmem:[#allocation2] sm:$0xf] %vm498_vm0, %v489_v18  ;;  %v393_v27 = vadd.f32 %v384_v20, %v351_v17  ;;  %v352_v28 = vmul.f32 %v1897_v41, %v2427_v40  ;;  %v385_v31 = vmul.f32 %v1910_v42, %v2434_v45  ;;  %v429_v32 = vmul.f32 %v1929_v43, %v2440_v49 }
  0x43   : > { %500 = vst.msk [vmem:[#allocation2 + $0x4] sm:$0xf] %vm498_vm0, %v490_v19  ;;  %v492_v34 = vpack.c.bf16 %v479_v23, %v479_v23  ;;  %v480_v36 = vadd.f32 %v471_v13, %v436_v24  ;;  %v1942_v37 = vunpack.c.h.bf16 %v2410_v29  ;;  %v1898_v38 = vunpack.c.h.bf16 %v2415_v30 }
  0x44   : > { %501 = vst.msk [vmem:[#allocation2 + $0x8] sm:$0xf] %vm498_vm0, %v491_v22  ;;  %v437_v39 = vadd.f32 %v428_v21, %v393_v27  ;;  %v394_v41 = vadd.f32 %v385_v31, %v352_v28  ;;  %v1913_v44 = vunpack.c.l.bf16 %v1953_v26  ;;  %v1930_v42 = vunpack.c.h.bf16 %v2421_v35 }
  0x45   : > { %502 = vst.msk [vmem:[#allocation2 + $0xc] sm:$0xf] %vm498_vm0, %v492_v34  ;;  %v493_v43 = vpack.c.bf16 %v480_v36, %v480_v36  ;;  %v473_v46 = vmul.f32 %v1942_v37, %v2446_v53  ;;  %v353_v47 = vmul.f32 %v1898_v38, %v2427_v40  ;;  %v1945_v48 = vunpack.c.l.bf16 %v1961_v33 }
  0x46   : > { %v481_v50 = vadd.f32 %v472_v25, %v437_v39  ;;  %v438_v51 = vadd.f32 %v429_v32, %v394_v41  ;;  %v386_v29 = vmul.f32 %v1913_v44, %v2434_v45  ;;  %v430_v30 = vmul.f32 %v1930_v42, %v2440_v49 }
  0x47   : > { %503 = vst.msk [vmem:[#allocation2 + $0x10] sm:$0xf] %vm498_vm0, %v493_v43  ;;  %v474_v35 = vmul.f32 %v1945_v48, %v2446_v53  ;;  %v344_v54 = vunpack.c.l.bf16 %v2352_v1  ;;  %v1914_v55 = vunpack.c.h.bf16 %v1953_v26  ;;  %v421_v56 = vunpack.c.l.bf16 %v2365_v6 }
  0x48   : > { %v494_v58 = vpack.c.bf16 %v481_v50, %v481_v50  ;;  %v482_v59 = vadd.f32 %v473_v46, %v438_v51  ;;  %v395_v60 = vadd.f32 %v386_v29, %v353_v47  ;;  %v1946_v61 = vunpack.c.h.bf16 %v1961_v33 }
  0x49   : > { %v354_v63 = vmul.f32 %v2427_v40, %v344_v54  ;;  %v387_v0 = vmul.f32 %v1914_v55, %v2434_v45  ;;  %v431_v1 = vmul.f32 %v2440_v49, %v421_v56  ;;  %v356_v6 = vmul.f32 %v355_v52, %v2427_v40 }
  0x4a   : > { %504 = vst.msk [vmem:[#allocation2 + $0x14] sm:$0xf] %vm498_vm0, %v494_v58  ;;  %v495_v3 = vpack.c.bf16 %v482_v59, %v482_v59  ;;  %v439_v4 = vadd.f32 %v430_v30, %v395_v60  ;;  %v399_v5 = vmul.f32 %v1820_v57, %v2434_v45  ;;  %v475_v8 = vmul.f32 %v1946_v61, %v2446_v53 }
  0x4b   : > { %v396_v7 = vadd.f32 %v387_v0, %v354_v63  ;;  %v443_v9 = vmul.f32 %v1830_v62, %v2440_v49  ;;  %v487_v40 = vmul.f32 %v1840_v2, %v2446_v53 }
  0x4c   : > { %505 = vst.msk [vmem:[#allocation2 + $0x18] sm:$0xf] %vm498_vm0, %v495_v3  ;;  %v483_v10 = vadd.f32 %v474_v35, %v439_v4  ;;  %v400_v11 = vadd.f32 %v399_v5, %v356_v6 }
  0x4d   : > { %v440_v12 = vadd.f32 %v431_v1, %v396_v7 }
  0x4e   : > { %v496_v13 = vpack.c.bf16 %v483_v10, %v483_v10  ;;  %v444_v14 = vadd.f32 %v443_v9, %v400_v11 }
  0x4f   : > { %v484_v15 = vadd.f32 %v475_v8, %v440_v12 }
  0x50   : > { %506 = vst.msk [vmem:[#allocation2 + $0x1c] sm:$0xf] %vm498_vm0, %v496_v13  ;;  %v488_v45 = vadd.f32 %v487_v40, %v444_v14 }
  0x51   : > { %v497_v17 = vpack.c.bf16 %v484_v15, %v484_v15 }
  0x52   : > { %v509_v49 = vadd.f32 %v508_v16, %v488_v45 }
  0x53   : > { %507 = vst.msk [vmem:[#allocation2 + $0x20] sm:$0xf] %vm498_vm0, %v497_v17 }
  0x54   : > { %511 = vst.msk [vmem:[#allocation3] sm:$0xff] %vm510_vm1, %v509_v49 }
  0x55 PF: > { %v512_v53 = vld [vmem:[%s2832_s5] sm:$0xf]  ;;  %v650_v18 = vld [vmem:[%s2338_s0 + $0x8] sm:$0x3]  ;;  %vm551_vm2 = vcmask 1043456   ;;  %s2201_s19 = smov 127  }
  0x56   : > { %522 = vst [vmem:[#allocation1] ss:$9 sm:$0xff] %v512_v53  ;;  %v2521_v27 = vld [vmem:[%s2338_s0] sm:$0xff]  ;;  %s2202_s10 = smov 2   ;;  %s2203_s11 = smov 34   ;;  %vm795_vm3 = vcmask 15360  }
  0x57   : > { %v2524_v37 = vunpack.c.l.bf16 %v2521_v27  ;;  %v2527_v41 = vunpack.c.h.bf16 %v2521_v27  ;;  %v513_v35 = vld [vmem:[%s2833_s6] sm:$0xf]  ;;  %s2204_s20 = smov 32   ;;  %v755_v15 = vld [vmem:[%s2338_s0 + $0x8] sm:$0x3]  ;;  %vm932_vm4 = vcmask 261120  }
  0x58   : > { %v776_v45 = vunpack.c.l.bf16 %v755_v15  ;;  %s2205_s29 = smov 126   ;;  %s2206_s21 = smov 64   ;;  %vm1174_vm5 = vcmask 277504   ;;  %vm580_vm6 = vcmask 1041408   ;;  %vm678_vm7 = vcmask 1039360  }
  0x59   : > { %s2207_s13 = smov 96   ;;  %s2208_s17 = smov 95   ;;  %vm576_vm8 = vcmask 31744   ;;  %vm845_vm9 = vcmask 1031168   ;;  %vm1311_vm10 = vcmask 523264   ;;  %vm982_vm11 = vcmask 785408  }
  0x5a   : > { %s2209_s23 = smov 94   ;;  %s2210_s30 = smov 66   ;;  %vm1087_vm12 = vcmask 777216   ;;  %vm1224_vm13 = vcmask 769024   ;;  %vm1553_vm14 = vcmask 539648   ;;  %vm1466_vm15 = vcmask 515072  }
  0x5b   : > { %s2211_s18 = smov 63   ;;  %vm1603_vm0 = vcmask 506880   ;;  %s1878_s14 = sshll.u32 %s2182_s27, 2 }
  0x5d   : > { %v523_v19 = vld [vmem:[#allocation1] sm:$0xff]  ;;  %v524_v20 = vld [vmem:[#allocation1 + $0x9] sm:$0xff]  ;;  %v525_v21 = vld [vmem:[#allocation1 + $0x12] sm:$0xff] }
  0x5e   : > { %v526_v22 = vld [vmem:[#allocation1 + $0x1b] sm:$0xff]  ;;  %v527_v23 = vpack.i.b16 %v523_v19, %v523_v19  ;;  %v530_v24 = vpack.i.b16 %v524_v20, %v524_v20  ;;  %v533_v25 = vpack.i.b16 %v525_v21, %v525_v21 }
  0x5f   : > { %v536_v26 = vpack.i.b16 %v526_v22, %v526_v22  ;;  %657 = vst [vmem:[#allocation1 + $0x20] ss:$4 sm:$0xff] %v650_v18 }
  0x60   : > { %v529_v28 = vperm.slane %v527_v23, 0  ;;  %v532_v31 = vperm.slane %v530_v24, 0  ;;  %v535_v32 = vperm.slane %v533_v25, 0  ;;  %v922_v24 = vld [vmem:[%s2338_s0 + $0x8] sm:$0x3] }
  0x61   : > { %v538_v33 = vperm.slane %v536_v26, 0 }
  0x62   : > { %v541_v34 = vunpack.c.l.bf16 %v529_v28  ;;  %v542_v36 = vunpack.c.l.bf16 %v532_v31  ;;  %v543_v38 = vunpack.c.l.bf16 %v535_v32  ;;  %v925_v28 = vunpack.c.l.bf16 %v922_v24 }
  0x63   : > { %v544_v39 = vunpack.c.l.bf16 %v538_v33 }
  0x64   : > { %v549_v44 = vrot.slane %v542_v36, 4 }
  0x65   : > { %v550_v42 = vrot.slane %v544_v39, 4 }
  0x66   : > { %v552_v43 = vsel %vm551_vm2, %v541_v34, %v549_v44  ;;  %v666_v46 = vld.sshfl [vmem:[#allocation1 + $0x20] sm:$0xff pattern:$0x73625140] }
  0x67   : > { %v553_v47 = vsel %vm551_vm2, %v543_v38, %v550_v42  ;;  %v556_v48 = vmul.f32 %v552_v43, %v2524_v37  ;;  %676 = vrot.lane.b32.xlu2 %v666_v46, %s2201_s19 }
  0x68   : > { %v557_v50 = vmul.f32 %v553_v47, %v2527_v41  ;;  %v2064_v14 = vpack.i.bf16 %v553_v47, %v552_v43 }
  0x69   : > { %560 = vst [vmem:[#allocation1] ss:$2 sm:$0xff] %v556_v48 }
  0x6a   : > { %562 = vst [vmem:[#allocation1 + $0x10] ss:$2 sm:$0xff] %v557_v50 }
  0x70   : > { %v2534_v51 = vld.sshfl [vmem:[#allocation1] sm:$0xff pattern:$0x75316420]  ;;  %v2536_v29 = vld.sshfl [vmem:[#allocation1 + $0x8] sm:$0xff pattern:$0x75316420] }
  0x71   : > { %v2538_v30 = vld.sshfl [vmem:[#allocation1 + $0x10] sm:$0xff pattern:$0x75316420]  ;;  %v2540_v52 = vld.sshfl [vmem:[#allocation1 + $0x18] sm:$0xff pattern:$0x75316420] }
  0x72   : > { %654 = vst [vmem:[#allocation1] ss:$4 sm:$0xff] %v2521_v27 }
  0x79   : > { %v658_v54 = vld.sshfl [vmem:[#allocation1] sm:$0xff pattern:$0x73625140]  ;;  %v660_v55 = vld.sshfl [vmem:[#allocation1 + $0x8] sm:$0xff pattern:$0x73625140] }
  0x7a   : > { %v662_v56 = vld.sshfl [vmem:[#allocation1 + $0x10] sm:$0xff pattern:$0x73625140]  ;;  %v664_v57 = vld.sshfl [vmem:[#allocation1 + $0x18] sm:$0xff pattern:$0x73625140]  ;;  %668 = vrot.lane.b32.xlu2 %v658_v54, %s2201_s19 }
  0x7b   : > { %757 = vst [vmem:[#allocation1] ss:$9 sm:$0xff] %v513_v35  ;;  %672 = vrot.lane.b32.xlu1 %v662_v56, %s2201_s19 }
  0x82   : > { %v758_v58 = vld [vmem:[#allocation1] sm:$0xff]  ;;  %v759_v59 = vld [vmem:[#allocation1 + $0x9] sm:$0xff]  ;;  %v760_v60 = vld [vmem:[#allocation1 + $0x12] sm:$0xff] }
  0x83   : > { %v761_v61 = vld [vmem:[#allocation1 + $0x1b] sm:$0xff]  ;;  %v762_v62 = vpack.i.b16 %v758_v58, %v758_v58  ;;  %v765_v63 = vpack.i.b16 %v759_v59, %v759_v59  ;;  %v768_v0 = vpack.i.b16 %v760_v60, %v760_v60  ;;  %674 = vrot.lane.b32.xlu1 %v664_v57, %s2201_s19  ;;  %v1059_v59 = vld [vmem:[%s2338_s0 + $0x8] sm:$0x3] }
  0x84   : > { %v771_v1 = vpack.i.b16 %v761_v61, %v761_v61 }
  0x85   : > { %v764_v6 = vperm.slane %v762_v62, 0  ;;  %v767_v2 = vperm.slane %v765_v63, 0  ;;  %v770_v3 = vperm.slane %v768_v0, 0 }
  0x86   : > { %v773_v4 = vperm.slane %v771_v1, 0 }
  0x87   : > { %v777_v5 = vunpack.c.l.bf16 %v764_v6  ;;  %v778_v7 = vunpack.c.l.bf16 %v767_v2  ;;  %v779_v8 = vunpack.c.l.bf16 %v770_v3 }
  0x88   : > { %v780_v9 = vunpack.c.l.bf16 %v773_v4 }
  0x89   : > { %v785_v10 = vrot.slane %v778_v7, 4 }
  0x8a   : > { %v786_v11 = vrot.slane %v780_v9, 4 }
  0x8b   : > { %v787_v40 = vsel %vm551_vm2, %v777_v5, %v785_v10  ;;  %v1164_v5 = vld [vmem:[%s2338_s0 + $0x8] sm:$0x3] }
  0x8c   : > { %v788_v12 = vsel %vm551_vm2, %v779_v8, %v786_v11  ;;  %v1167_v7 = vunpack.c.l.bf16 %v1164_v5  ;;  %v829_v5 = vld [vmem:[#allocation2 + $0x8] sm:$0xf] }
  0x8d   : > { %v2551_v13 = vpack.i.bf16 %v788_v12, %v787_v40 }
  0x8f   : > { %2060 = vrot.lane.b32.xlu0 %v2551_v13, %s2202_s10  ;;  %2070 = vrot.lane.b32.xlu1 %v2551_v13, %s2203_s11 }
  0x97   : > { %2065 = vrot.lane.b32.xlu0 %v2064_v14, %s2204_s20 }
  0x9f   : > { %670 = vrot.lane.b32.xlu0 %v660_v55, %s2201_s19  ;;  %s1879_s19 = sshll.u32 %s2186_s28, 3  ;;  %s1703_s28 = sshll.u32 %s2340_s12, 4  ;;  %s1704_s28 = int_to_ptr.vmem [resolvable:$true] %s1703_s28 }
  0xa0   : > { %s1699_s1 = sadd.s32 %s1879_s19, %s1878_s14 }
  0xa1   : > { %s1880_s9 = sshll.u32 %s1699_s1, 3 }
  0xa2   : > { %s1701_s27 = scalar_lea.hbm %s2834_s7, %s1880_s9 }
  0xa3   : > { %s1705_s20 = sshll.u32 %s1701_s27, 4  ;;  %s1706_s20 = int_to_ptr.hbm [resolvable:$true] %s1705_s20 }
  0xed   : > { %v2561_v33 = vpop.permute.xlu1 %672 }
  0xf5   : > { %v2566_v58 = vpop.permute.xlu1 %674 }
 0x101   : > { %v2061_v16 = vpop.permute.xlu0 %2060  ;;  %v2071_v2 = vpop.permute.xlu1 %2070 }
 0x102   : > { %v2063_v17 = vunpack.i.h.bf16 %v2061_v16  ;;  %v2062_v49 = vunpack.i.l.bf16 %v2061_v16  ;;  %v2073_v3 = vunpack.i.h.bf16 %v2071_v2  ;;  %v2072_v4 = vunpack.i.l.bf16 %v2071_v2 }
 0x104   : > { %v794_v53 = vrot.slane %v2063_v17, 4  ;;  %v793_v18 = vrot.slane %v2062_v49, 4  ;;  %v1173_v8 = vrot.slane %v2073_v3, 4  ;;  %v1172_v9 = vrot.slane %v2072_v4, 4 }
 0x106   : > { %v804_v19 = vmul.f32 %v794_v53, %v776_v45  ;;  %v796_v20 = vsel %vm795_vm3, %v793_v18, %v2062_v49  ;;  %v797_v21 = vsel %vm551_vm2, %v793_v18, %v794_v53  ;;  %v1183_v11 = vmul.f32 %v1173_v8, %v1167_v7  ;;  %v1301_v7 = vld [vmem:[%s2338_s0 + $0x8] sm:$0x3] }
 0x107   : > { %v798_v22 = vsel %vm795_vm3, %v797_v21, %v2063_v17  ;;  %v802_v23 = vmul.f32 %v796_v20, %v2524_v37  ;;  %v1175_v40 = vsel %vm1174_vm5, %v1172_v9, %v2072_v4  ;;  %v1176_v12 = vsel %vm551_vm2, %v1172_v9, %v1173_v8 }
 0x108   : > { %812 = vst [vmem:[#allocation1 + $0x20] ss:$2 sm:$0xff] %v804_v19  ;;  %v803_v25 = vmul.f32 %v798_v22, %v2527_v41  ;;  %v1177_v15 = vsel %vm1174_vm5, %v1176_v12, %v2073_v3  ;;  %v1181_v16 = vmul.f32 %v1175_v40, %v2524_v37  ;;  %v1304_v9 = vunpack.c.l.bf16 %v1301_v7 }
 0x109   : > { %808 = vst [vmem:[#allocation1] ss:$2 sm:$0xff] %v802_v23  ;;  %v2066_v26 = vpop.permute.xlu0 %2065  ;;  %v1182_v45 = vmul.f32 %v1177_v15, %v2527_v41 }
 0x10a   : > { %810 = vst [vmem:[#allocation1 + $0x10] ss:$2 sm:$0xff] %v803_v25  ;;  %v2068_v31 = vunpack.i.h.bf16 %v2066_v26  ;;  %v2067_v32 = vunpack.i.l.bf16 %v2066_v26 }
 0x10c   : > { %v931_v34 = vrot.slane %v2068_v31, 4  ;;  %v930_v36 = vrot.slane %v2067_v32, 4 }
 0x10e   : > { %v941_v38 = vmul.f32 %v931_v34, %v925_v28  ;;  %v933_v39 = vsel %vm932_vm4, %v930_v36, %v2067_v32  ;;  %v934_v44 = vsel %vm551_vm2, %v930_v36, %v931_v34 }
 0x10f   : > { %v935_v42 = vsel %vm932_vm4, %v934_v44, %v2068_v31  ;;  %v939_v43 = vmul.f32 %v933_v39, %v2524_v37  ;;  %v817_v46 = vld.sshfl [vmem:[#allocation1 + $0x20] sm:$0xff pattern:$0x75316420]  ;;  %v572_v44 = vpack.c.bf16 %v2536_v29, %v2536_v29 }
 0x110   : > { %v940_v47 = vmul.f32 %v935_v42, %v2527_v41  ;;  %v827_v48 = vpack.c.bf16 %v817_v46, %v817_v46  ;;  %949 = vst [vmem:[#allocation1 + $0x20] ss:$2 sm:$0xff] %v941_v38  ;;  %v814_v50 = vld.sshfl [vmem:[#allocation1 + $0x8] sm:$0xff pattern:$0x75316420] }
 0x111   : > { %v816_v35 = vld.sshfl [vmem:[#allocation1 + $0x18] sm:$0xff pattern:$0x75316420]  ;;  %v815_v54 = vld.sshfl [vmem:[#allocation1 + $0x10] sm:$0xff pattern:$0x75316420]  ;;  %v824_v63 = vpack.c.bf16 %v814_v50, %v814_v50  ;;  %v671_v39 = vpop.permute.xlu0 %670  ;;  %v677_v50 = vpop.permute.xlu2 %676 }
 0x112   : > { %843 = vrot.lane.b32.xlu1 %v827_v48, %s2205_s29  ;;  %v826_v55 = vpack.c.bf16 %v816_v35, %v816_v35  ;;  %v825_v56 = vpack.c.bf16 %v815_v54, %v815_v54  ;;  %947 = vst [vmem:[#allocation1 + $0x10] ss:$2 sm:$0xff] %v940_v47  ;;  %v813_v57 = vld.sshfl [vmem:[#allocation1] sm:$0xff pattern:$0x75316420]  ;;  %v680_v42 = vsel %vm678_vm7, %v671_v39, %v2561_v33  ;;  %v585_v46 = vsel %vm580_vm6, %v572_v44, 0 }
 0x113   : > { %945 = vst [vmem:[#allocation1] ss:$2 sm:$0xff] %v939_v43  ;;  %v823_v0 = vpack.c.bf16 %v813_v57, %v813_v57  ;;  %v681_v43 = vsel %vm678_vm7, %v2561_v33, %v2566_v58  ;;  %v690_v48 = vsel %vm580_vm6, %v680_v42, 0  ;;  %613 = vmatpush.bf16.msra.mxu1 %v585_v46  ;;  %v682_v33 = vsel %vm678_vm7, %v2566_v58, %v677_v50  ;;  %v575_v54 = vld [vmem:[#allocation2] sm:$0xf] }
 0x114   : > { %841 = vrot.lane.b32.xlu0 %v826_v55, %s2205_s29  ;;  %839 = vrot.lane.b32.xlu2 %v825_v56, %s2205_s29  ;;  %v693_v29 = vsel %vm580_vm6, %v681_v43, 0  ;;  %v696_v55 = vsel %vm580_vm6, %v682_v33, 0  ;;  %v571_v56 = vpack.c.bf16 %v2534_v51, %v2534_v51 }
 0x116   : > { %1842 = vmatmul.msk.bf16.vlgmr.msra.gmra.mxu1 %vm576_vm8, %v575_v54 }
 0x117   : > { %v954_v60 = vld.sshfl [vmem:[#allocation1 + $0x20] sm:$0xff pattern:$0x75316420]  ;;  %718 = vmatpush.bf16.msrb.mxu1 %v690_v48 }
 0x118   : > { %1066 = vst [vmem:[#allocation1 + $0x20] ss:$4 sm:$0xff] %v1059_v59  ;;  %v964_v10 = vpack.c.bf16 %v954_v60, %v954_v60  ;;  %v652_v60 = vld [vmem:[#allocation2 + $0x4] sm:$0xf] }
 0x119   : > { %v953_v61 = vld.sshfl [vmem:[#allocation1 + $0x18] sm:$0xff pattern:$0x75316420]  ;;  %v952_v62 = vld.sshfl [vmem:[#allocation1 + $0x10] sm:$0xff pattern:$0x75316420]  ;;  %v669_v57 = vpop.permute.xlu2 %668 }
 0x11a   : > { %2075 = vrot.lane.b32.xlu1 %v2064_v14, %s2206_s21  ;;  %v950_v1 = vld.sshfl [vmem:[#allocation1] sm:$0xff pattern:$0x75316420]  ;;  %v951_v6 = vld.sshfl [vmem:[#allocation1 + $0x8] sm:$0xff pattern:$0x75316420]  ;;  %v963_v17 = vpack.c.bf16 %v953_v61, %v953_v61  ;;  %v962_v49 = vpack.c.bf16 %v952_v62, %v952_v62  ;;  %v679_v58 = vsel %vm678_vm7, %v669_v57, %v671_v39 }
 0x11b   : > { %1063 = vst [vmem:[#allocation1] ss:$4 sm:$0xff] %v2521_v27  ;;  %v961_v21 = vpack.c.bf16 %v951_v6, %v951_v6  ;;  %v960_v22 = vpack.c.bf16 %v950_v1, %v950_v1  ;;  %v687_v59 = vsel %vm580_vm6, %v679_v58, 0 }
 0x11c   : > { %837 = vrot.lane.b32.xlu0 %v824_v63, %s2205_s29  ;;  %835 = vrot.lane.b32.xlu2 %v823_v0, %s2205_s29  ;;  %s2850_s29 = sand.u32 1, %s2174_s25  }
 0x11f   : > { %v1075_v14 = vld.sshfl [vmem:[#allocation1 + $0x20] sm:$0xff pattern:$0x73625140] }
 0x120   : > { %1191 = vst [vmem:[#allocation1 + $0x20] ss:$2 sm:$0xff] %v1183_v11 }
 0x122   : > { %980 = vrot.lane.b32.xlu1 %v964_v10, %s2207_s13  ;;  %v1071_v53 = vld.sshfl [vmem:[#allocation1 + $0x10] sm:$0xff pattern:$0x73625140]  ;;  %v1067_v18 = vld.sshfl [vmem:[#allocation1] sm:$0xff pattern:$0x73625140] }
 0x123   : > { %v1069_v19 = vld.sshfl [vmem:[#allocation1 + $0x8] sm:$0xff pattern:$0x73625140]  ;;  %v1073_v20 = vld.sshfl [vmem:[#allocation1 + $0x18] sm:$0xff pattern:$0x73625140] }
 0x124   : > { %978 = vrot.lane.b32.xlu0 %v963_v17, %s2207_s13  ;;  %976 = vrot.lane.b32.xlu2 %v962_v49, %s2207_s13  ;;  %1187 = vst [vmem:[#allocation1] ss:$2 sm:$0xff] %v1181_v16 }
 0x125   : > { %1189 = vst [vmem:[#allocation1 + $0x10] ss:$2 sm:$0xff] %v1182_v45 }
 0x126   : > { %1846 = vmatmul.msk.bf16.vlgmr.msrb.gmra.mxu1 %vm576_vm8, %v652_v60 }
 0x127   : > { %v1196_v26 = vld.sshfl [vmem:[#allocation1 + $0x20] sm:$0xff pattern:$0x75316420] }
 0x128   : > { %v1206_v31 = vpack.c.bf16 %v1196_v26, %v1196_v26 }
 0x12a   : > { %1081 = vrot.lane.b32.xlu1 %v1071_v53, %s2208_s17 }
 0x12b   : > { %v1192_v25 = vld.sshfl [vmem:[#allocation1] sm:$0xff pattern:$0x75316420]  ;;  %v1193_v36 = vld.sshfl [vmem:[#allocation1 + $0x8] sm:$0xff pattern:$0x75316420] }
 0x12c   : > { %974 = vrot.lane.b32.xlu0 %v961_v21, %s2207_s13  ;;  %972 = vrot.lane.b32.xlu2 %v960_v22, %s2207_s13  ;;  %v1194_v23 = vld.sshfl [vmem:[#allocation1 + $0x10] sm:$0xff pattern:$0x75316420]  ;;  %v1202_v28 = vpack.c.bf16 %v1192_v25, %v1192_v25  ;;  %v1195_v32 = vld.sshfl [vmem:[#allocation1 + $0x18] sm:$0xff pattern:$0x75316420]  ;;  %v1203_v38 = vpack.c.bf16 %v1193_v36, %v1193_v36 }
 0x12d   : > { %v1204_v24 = vpack.c.bf16 %v1194_v23, %v1194_v23  ;;  %v1205_v34 = vpack.c.bf16 %v1195_v32, %v1195_v32  ;;  %v966_v32 = vld [vmem:[#allocation2 + $0xc] sm:$0xf]  ;;  %s2114_s13 = sshra.s32 %s1706_s20, 4  ;;  %s2115_s13 = int_to_ptr.hbm [resolvable:$true] %s2114_s13 }
 0x12e   : > { %p2121_p9 = scmp.lt.s32.totalorder %s2115_s13, %s2834_s7 }
 0x132   : > { %1077 = vrot.lane.b32.xlu1 %v1067_v18, %s2208_s17 }
 0x134   : > { %1085 = vrot.lane.b32.xlu0 %v1075_v14, %s2208_s17  ;;  %1083 = vrot.lane.b32.xlu2 %v1073_v20, %s2208_s17 }
 0x13a   : > { %1218 = vrot.lane.b32.xlu1 %v1204_v24, %s2209_s23 }
 0x13c   : > { %2080 = vrot.lane.b32.xlu0 %v2551_v13, %s2210_s30  ;;  %1079 = vrot.lane.b32.xlu2 %v1069_v19, %s2208_s17  ;;  %v573_v13 = vpack.c.bf16 %v2538_v30, %v2538_v30  ;;  %v574_v30 = vpack.c.bf16 %v2540_v52, %v2540_v52  ;;  %v582_v52 = vsel %vm580_vm6, %v571_v56, 0  ;;  %s2116_s17 = scalar_lea.hbm %s2115_s13, 32 }
 0x13d   : > { %600 = vmatpush.bf16.msra.mxu0 %v582_v52  ;;  %p2117_p5 = scmp.ne.s32.totalorder %s2115_s13, %s2116_s17 }
 0x13e   : > { %v588_v47 = vsel %vm580_vm6, %v573_v13, 0  ;;  %v591_v35 = vsel %vm580_vm6, %v574_v30, 0 }
 0x13f   : > { %626 = vmatpush.bf16.msra.mxu2 %v588_v47  ;;  %639 = vmatpush.bf16.msra.mxu3 %v591_v35  ;;  %p2118_p6 = pnand %p2117_p5, %p2306_p3 }
 0x140   : > { %1841 = vmatmul.msk.bf16.vlgmr.msra.gmra.mxu0 %vm576_vm8, %v575_v54 }
 0x141   : > { %705 = vmatpush.bf16.msrb.mxu0 %v687_v59  ;;  %p2119_p7 = pneg %p2118_p6 }
 0x142   : > { %1214 = vrot.lane.b32.xlu1 %v1202_v28, %s2209_s23  ;;  %1843 = vmatmul.msk.bf16.vlgmr.msra.gmra.mxu2 %vm576_vm8, %v575_v54 }
 0x143   : > { %731 = vmatpush.bf16.msrb.mxu2 %v693_v29  ;;  %744 = vmatpush.bf16.msrb.mxu3 %v696_v55 }
 0x144   : > { %1222 = vrot.lane.b32.xlu0 %v1206_v31, %s2209_s23  ;;  %1220 = vrot.lane.b32.xlu2 %v1205_v34, %s2209_s23 }
 0x145   : > { %1844 = vmatmul.msk.bf16.vlgmr.msra.gmra.mxu3 %vm576_vm8, %v575_v54 }
 0x14c   : > { %1216 = vrot.lane.b32.xlu2 %v1203_v38, %s2209_s23  ;;  %v1438_v38 = vld [vmem:[%s2338_s0 + $0x8] sm:$0x3] }
 0x150   : > { %1845 = vmatmul.msk.bf16.vlgmr.msrb.gmra.mxu0 %vm576_vm8, %v652_v60 }
 0x152   : > { %1847 = vmatmul.msk.bf16.vlgmr.msrb.gmra.mxu2 %vm576_vm8, %v652_v60 }
 0x155   : > { %1848 = vmatmul.msk.bf16.vlgmr.msrb.gmra.mxu3 %vm576_vm8, %v652_v60 }
 0x16e   : > { %v840_v51 = vpop.permute.xlu2 %839 }
 0x176   : > { %v836_v61 = vpop.permute.xlu2 %835 }
 0x17e   : > { %v2608_v62 = vpop.permute.xlu2 %976 }
 0x184   : > { %v844_v63 = vpop.permute.xlu1 %843 }
 0x186   : > { %v842_v0 = vpop.permute.xlu0 %841  ;;  %v2610_v1 = vpop.permute.xlu2 %972 }
 0x187   : > { %v848_v6 = vsel %vm845_vm9, %v840_v51, %v842_v0  ;;  %v849_v2 = vsel %vm845_vm9, %v842_v0, %v844_v63 }
 0x188   : > { %v860_v3 = vsel %vm580_vm6, %v848_v6, 0  ;;  %v863_v4 = vsel %vm580_vm6, %v849_v2, 0  ;;  %v2212_v2 = vmov 0  }
 0x189   : > { %898 = vmatpush.bf16.msra.mxu2 %v860_v3  ;;  %911 = vmatpush.bf16.msra.mxu3 %v863_v4  ;;  %v1543_v3 = vld [vmem:[%s2338_s0 + $0x8] sm:$0x3]  ;;  %s2213_s0 = smov 62  }
 0x18a   : > { %2084 = vset.pattern.permute.xlu0 %v2212_v2 }
 0x18c   : > { %v2076_v8 = vpop.permute.xlu1 %2075  ;;  %1851 = vmatmul.msk.bf16.vlgmr.msra.gmra.mxu2 %vm576_vm8, %v829_v5  ;;  %1852 = vmatmul.msk.bf16.vlgmr.msra.gmra.mxu3 %vm576_vm8, %v829_v5 }
 0x18d   : > { %v2078_v10 = vunpack.i.h.bf16 %v2076_v8  ;;  %v2077_v11 = vunpack.i.l.bf16 %v2076_v8 }
 0x18e   : > { %v838_v40 = vpop.permute.xlu0 %837  ;;  %v2623_v49 = vpop.permute.xlu2 %1083 }
 0x18f   : > { %v1310_v12 = vrot.slane %v2078_v10, 4  ;;  %v1309_v14 = vrot.slane %v2077_v11, 4  ;;  %v846_v15 = vsel %vm845_vm9, %v836_v61, %v838_v40  ;;  %v847_v16 = vsel %vm845_vm9, %v838_v40, %v840_v51 }
 0x190   : > { %v854_v45 = vsel %vm580_vm6, %v846_v15, 0  ;;  %v857_v17 = vsel %vm580_vm6, %v847_v16, 0 }
 0x191   : > { %v1320_v53 = vmul.f32 %v1310_v12, %v1304_v9  ;;  %v1312_v18 = vsel %vm1311_vm10, %v1309_v14, %v2077_v11  ;;  %v1313_v19 = vsel %vm551_vm2, %v1309_v14, %v1310_v12  ;;  %872 = vmatpush.bf16.msra.mxu0 %v854_v45  ;;  %885 = vmatpush.bf16.msra.mxu1 %v857_v17  ;;  %v1546_v14 = vunpack.c.l.bf16 %v1543_v3 }
 0x192   : > { %v1314_v20 = vsel %vm1311_vm10, %v1313_v19, %v2078_v10  ;;  %v1318_v21 = vmul.f32 %v1312_v18, %v2524_v37 }
 0x193   : > { %v1319_v22 = vmul.f32 %v1314_v20, %v2527_v41  ;;  %1328 = vst [vmem:[#allocation1 + $0x20] ss:$2 sm:$0xff] %v1320_v53 }
 0x194   : > { %1324 = vst [vmem:[#allocation1] ss:$2 sm:$0xff] %v1318_v21  ;;  %v981_v23 = vpop.permute.xlu1 %980  ;;  %1850 = vmatmul.msk.bf16.vlgmr.msra.gmra.mxu1 %vm576_vm8, %v829_v5  ;;  %1849 = vmatmul.msk.bf16.vlgmr.msra.gmra.mxu0 %vm576_vm8, %v829_v5 }
 0x195   : > { %1326 = vst [vmem:[#allocation1 + $0x10] ss:$2 sm:$0xff] %v1319_v22 }
 0x196   : > { %v979_v24 = vpop.permute.xlu0 %978  ;;  %v1080_v34 = vpop.permute.xlu2 %1079 }
 0x197   : > { %v985_v25 = vsel %vm982_vm11, %v2608_v62, %v979_v24  ;;  %v986_v26 = vsel %vm982_vm11, %v979_v24, %v981_v23 }
 0x198   : > { %v997_v28 = vsel %vm580_vm6, %v985_v25, 0  ;;  %v1000_v31 = vsel %vm580_vm6, %v986_v26, 0 }
 0x199   : > { %1035 = vmatpush.bf16.msrb.mxu2 %v997_v28  ;;  %1048 = vmatpush.bf16.msrb.mxu3 %v1000_v31  ;;  %v1208_v31 = vld [vmem:[#allocation2 + $0x14] sm:$0xf] }
 0x19a   : > { %v1333_v36 = vld.sshfl [vmem:[#allocation1 + $0x20] sm:$0xff pattern:$0x75316420] }
 0x19b   : > { %v1329_v39 = vld.sshfl [vmem:[#allocation1] sm:$0xff pattern:$0x75316420]  ;;  %v1330_v44 = vld.sshfl [vmem:[#allocation1 + $0x8] sm:$0xff pattern:$0x75316420]  ;;  %v1343_v13 = vpack.c.bf16 %v1333_v36, %v1333_v36 }
 0x19c   : > { %v1082_v42 = vpop.permute.xlu1 %1081  ;;  %v1331_v43 = vld.sshfl [vmem:[#allocation1 + $0x10] sm:$0xff pattern:$0x75316420]  ;;  %v1332_v46 = vld.sshfl [vmem:[#allocation1 + $0x18] sm:$0xff pattern:$0x75316420]  ;;  %1855 = vmatmul.msk.bf16.vlgmr.msrb.gmra.mxu2 %vm576_vm8, %v966_v32  ;;  %1856 = vmatmul.msk.bf16.vlgmr.msrb.gmra.mxu3 %vm576_vm8, %v966_v32  ;;  %v1339_v60 = vpack.c.bf16 %v1329_v39, %v1329_v39  ;;  %v1340_v51 = vpack.c.bf16 %v1330_v44, %v1330_v44 }
 0x19d   : > { %v1090_v47 = vsel %vm1087_vm12, %v1082_v42, %v2623_v49  ;;  %1359 = vrot.lane.b32.xlu2 %v1343_v13, %s2206_s21  ;;  %v1341_v48 = vpack.c.bf16 %v1331_v43, %v1331_v43  ;;  %v1342_v29 = vpack.c.bf16 %v1332_v46, %v1332_v46  ;;  %v1089_v30 = vsel %vm1087_vm12, %v1080_v34, %v1082_v42  ;;  %v514_v44 = vld [vmem:[#allocation3] sm:$0xff] }
 0x19e   : > { %v1102_v50 = vsel %vm580_vm6, %v1090_v47, 0  ;;  %v975_v35 = vpop.permute.xlu0 %974  ;;  %1442 = vst [vmem:[#allocation1] ss:$4 sm:$0xff] %v2521_v27  ;;  %v1099_v52 = vsel %vm580_vm6, %v1089_v30, 0  ;;  %v2655_v27 = vpop.permute.xlu2 %1220 }
 0x19f   : > { %v983_v33 = vsel %vm982_vm11, %v2610_v1, %v975_v35  ;;  %v984_v54 = vsel %vm982_vm11, %v975_v35, %v2608_v62  ;;  %1355 = vrot.lane.b32.xlu0 %v1341_v48, %s2206_s21  ;;  %1357 = vrot.lane.b32.xlu1 %v1342_v29, %s2206_s21  ;;  %1445 = vst [vmem:[#allocation1 + $0x20] ss:$4 sm:$0xff] %v1438_v38  ;;  %v1061_v1 = vld [vmem:[#allocation2 + $0x10] sm:$0xf]  ;;  %v2695_v48 = vpop.f32.mrf.mxu1 }
 0x1a0   : > { %v991_v55 = vsel %vm580_vm6, %v983_v33, 0  ;;  %v994_v56 = vsel %vm580_vm6, %v984_v54, 0  ;;  %1140 = vmatpush.bf16.msra.mxu2 %v1102_v50 }
 0x1a1   : > { %1009 = vmatpush.bf16.msrb.mxu0 %v991_v55  ;;  %1022 = vmatpush.bf16.msrb.mxu1 %v994_v56 }
 0x1a4   : > { %v1078_v57 = vpop.permute.xlu1 %1077  ;;  %1853 = vmatmul.msk.bf16.vlgmr.msrb.gmra.mxu0 %vm576_vm8, %v966_v32  ;;  %1854 = vmatmul.msk.bf16.vlgmr.msrb.gmra.mxu1 %vm576_vm8, %v966_v32 }
 0x1a5   : > { %1127 = vmatpush.bf16.msra.mxu1 %v1099_v52  ;;  %v1088_v58 = vsel %vm1087_vm12, %v1078_v57, %v1080_v34  ;;  %v1450_v59 = vld.sshfl [vmem:[#allocation1 + $0x10] sm:$0xff pattern:$0x73625140]  ;;  %v1446_v5 = vld.sshfl [vmem:[#allocation1] sm:$0xff pattern:$0x73625140] }
 0x1a6   : > { %v1096_v61 = vsel %vm580_vm6, %v1088_v58, 0  ;;  %1460 = vrot.lane.b32.xlu2 %v1450_v59, %s2211_s18  ;;  %v1086_v62 = vpop.permute.xlu0 %1085  ;;  %v1217_v6 = vpop.permute.xlu2 %1216  ;;  %v1452_v7 = vld.sshfl [vmem:[#allocation1 + $0x18] sm:$0xff pattern:$0x73625140] }
 0x1a7   : > { %v1091_v63 = vsel %vm1087_vm12, %v2623_v49, %v1086_v62  ;;  %1351 = vrot.lane.b32.xlu0 %v1339_v60, %s2206_s21  ;;  %1353 = vrot.lane.b32.xlu1 %v1340_v51, %s2206_s21  ;;  %v1454_v11 = vld.sshfl [vmem:[#allocation1 + $0x20] sm:$0xff pattern:$0x73625140]  ;;  %v1448_v23 = vld.sshfl [vmem:[#allocation1 + $0x8] sm:$0xff pattern:$0x73625140]  ;;  %v617_v35 = vpop.f32.mrf.mxu1 }
 0x1a8   : > { %v1105_v0 = vsel %vm580_vm6, %v1091_v63, 0  ;;  %1114 = vmatpush.bf16.msra.mxu0 %v1096_v61  ;;  %s1688_s21 = scalar_lea.sflag [#allocation5], %s2850_s29 }
 0x1a9   : > { %1153 = vmatpush.bf16.msra.mxu3 %v1105_v0 }
 0x1ac   : > { %1859 = vmatmul.msk.bf16.vlgmr.msra.gmra.mxu2 %vm576_vm8, %v1061_v1  ;;  %1860 = vmatmul.msk.bf16.vlgmr.msra.gmra.mxu3 %vm576_vm8, %v1061_v1  ;;  %v1219_v4 = vpop.permute.xlu1 %1218 }
 0x1ad   : > { %v1227_v8 = vsel %vm1224_vm13, %v1219_v4, %v2655_v27  ;;  %v1226_v9 = vsel %vm1224_vm13, %v1217_v6, %v1219_v4 }
 0x1ae   : > { %1456 = vrot.lane.b32.xlu2 %v1446_v5, %s2211_s18  ;;  %v2081_v10 = vpop.permute.xlu0 %2080  ;;  %v1239_v40 = vsel %vm580_vm6, %v1227_v8, 0  ;;  %v1236_v12 = vsel %vm580_vm6, %v1226_v9, 0 }
 0x1af   : > { %v2083_v15 = vunpack.i.h.bf16 %v2081_v10  ;;  %v2082_v16 = vunpack.i.l.bf16 %v2081_v10  ;;  %1462 = vrot.lane.b32.xlu0 %v1452_v7, %s2211_s18  ;;  %1464 = vrot.lane.b32.xlu1 %v1454_v11, %s2211_s18  ;;  %v2703_v56 = vpop.f32.mrf.mxu1  ;;  %v1345_v7 = vld [vmem:[#allocation2 + $0x18] sm:$0xf] }
 0x1b0   : > { %1277 = vmatpush.bf16.msrb.mxu2 %v1239_v40  ;;  %1264 = vmatpush.bf16.msrb.mxu1 %v1236_v12 }
 0x1b1   : > { %v1552_v45 = vrot.slane %v2083_v15, 4  ;;  %v1551_v17 = vrot.slane %v2082_v16, 4 }
 0x1b3   : > { %v1562_v49 = vmul.f32 %v1552_v45, %v1546_v14  ;;  %v1554_v53 = vsel %vm1553_vm14, %v1551_v17, %v2082_v16  ;;  %v1555_v18 = vsel %vm551_vm2, %v1551_v17, %v1552_v45 }
 0x1b4   : > { %v1556_v19 = vsel %vm1553_vm14, %v1555_v18, %v2083_v15  ;;  %v1560_v20 = vmul.f32 %v1554_v53, %v2524_v37  ;;  %1857 = vmatmul.msk.bf16.vlgmr.msra.gmra.mxu0 %vm576_vm8, %v1061_v1  ;;  %1858 = vmatmul.msk.bf16.vlgmr.msra.gmra.mxu1 %vm576_vm8, %v1061_v1  ;;  %v1215_v21 = vpop.permute.xlu1 %1214 }
 0x1b5   : > { %v1561_v22 = vmul.f32 %v1556_v19, %v2527_v41  ;;  %1570 = vst [vmem:[#allocation1 + $0x20] ss:$2 sm:$0xff] %v1562_v49  ;;  %v1225_v24 = vsel %vm1224_vm13, %v1215_v21, %v1217_v6 }
 0x1b6   : > { %1566 = vst [vmem:[#allocation1] ss:$2 sm:$0xff] %v1560_v20  ;;  %v1223_v25 = vpop.permute.xlu0 %1222  ;;  %v1233_v26 = vsel %vm580_vm6, %v1225_v24, 0 }
 0x1b7   : > { %1568 = vst [vmem:[#allocation1 + $0x10] ss:$2 sm:$0xff] %v1561_v22  ;;  %1458 = vrot.lane.b32.xlu0 %v1448_v23, %s2211_s18  ;;  %v1228_v37 = vsel %vm1224_vm13, %v2655_v27, %v1223_v25  ;;  %1251 = vmatpush.bf16.msrb.mxu0 %v1233_v26  ;;  %v722_v58 = vpop.f32.mrf.mxu1  ;;  %s2120_s18 = scalar_lea.hbm %s2834_s7, 128 }
 0x1b8   : > { %v1242_v28 = vsel %vm580_vm6, %v1228_v37, 0  ;;  %v1440_v37 = vld [vmem:[#allocation2 + $0x1c] sm:$0xf]  ;;  %p2122_p10 = scmp.lt.s32.totalorder %s2120_s18, %s2116_s17 }
 0x1b9   : > { %1290 = vmatpush.bf16.msrb.mxu3 %v1242_v28 }
 0x1ba   : > { %p2123_p11 = por %p2122_p10, %p2121_p9 }
 0x1bc   : > { %v1575_v41 = vld.sshfl [vmem:[#allocation1 + $0x20] sm:$0xff pattern:$0x75316420]  ;;  %1863 = vmatmul.msk.bf16.vlgmr.msrb.gmra.mxu2 %vm576_vm8, %v1208_v31  ;;  %1864 = vmatmul.msk.bf16.vlgmr.msrb.gmra.mxu3 %vm576_vm8, %v1208_v31  ;;  %p2124_p12 = pnand %p2123_p11, %p2119_p7 }
 0x1bd   : > { %v1585_v32 = vpack.c.bf16 %v1575_v41, %v1575_v41  ;;  %v1571_v13 = vld.sshfl [vmem:[#allocation1] sm:$0xff pattern:$0x75316420]  ;;  %v1572_v42 = vld.sshfl [vmem:[#allocation1 + $0x8] sm:$0xff pattern:$0x75316420]  ;;  %v2693_v47 = vpop.f32.mrf.mxu0 }
 0x1be   : > { %v1573_v34 = vld.sshfl [vmem:[#allocation1 + $0x10] sm:$0xff pattern:$0x75316420]  ;;  %v1574_v36 = vld.sshfl [vmem:[#allocation1 + $0x18] sm:$0xff pattern:$0x75316420]  ;;  %v1581_v43 = vpack.c.bf16 %v1571_v13, %v1571_v13  ;;  %v1582_v46 = vpack.c.bf16 %v1572_v42, %v1572_v42 }
 0x1bf   : > { %1601 = vrot.lane.b32.xlu0 %v1585_v32, %s2213_s0  ;;  %v1583_v38 = vpack.c.bf16 %v1573_v34, %v1573_v34  ;;  %v1584_v39 = vpack.c.bf16 %v1574_v36, %v1574_v36 }
 0x1c1   : > { %1597 = vrot.lane.b32.xlu1 %v1583_v38, %s2213_s0  ;;  %1599 = vrot.lane.b32.xlu2 %v1584_v39, %s2213_s0 }
 0x1c4   : > { %1861 = vmatmul.msk.bf16.vlgmr.msrb.gmra.mxu0 %vm576_vm8, %v1208_v31  ;;  %1862 = vmatmul.msk.bf16.vlgmr.msrb.gmra.mxu1 %vm576_vm8, %v1208_v31 }
 0x1c5   : > { %v2697_v29 = vpop.f32.mrf.mxu2  ;;  %v604_v50 = vpop.f32.mrf.mxu0 }
 0x1c7   : > { %517 = vperm.xlu0 %2084, %v514_v44  }
 0x1c8   : > { %v2699_v30 = vpop.f32.mrf.mxu3 }
 0x1c9   : > { %1593 = vrot.lane.b32.xlu1 %v1581_v43, %s2213_s0  ;;  %1595 = vrot.lane.b32.xlu2 %v1582_v46, %s2213_s0 }
 0x1cd   : > { %v630_v33 = vpop.f32.mrf.mxu2  ;;  %v2701_v55 = vpop.f32.mrf.mxu0 }
 0x1d0   : > { %v643_v54 = vpop.f32.mrf.mxu3 }
 0x1d5   : > { %v2705_v52 = vpop.f32.mrf.mxu2  ;;  %v709_v57 = vpop.f32.mrf.mxu0 }
 0x1d8   : > { %v2707_v27 = vpop.f32.mrf.mxu3 }
 0x1dd   : > { %v735_v59 = vpop.f32.mrf.mxu2 }
 0x1e0   : > { %v748_v60 = vpop.f32.mrf.mxu3 }
 0x1f7   : > { %v1360_v51 = vpop.permute.xlu2 %1359 }
 0x200   : > { %v1461_v8 = vpop.permute.xlu2 %1460 }
 0x208   : > { %v1457_v18 = vpop.permute.xlu2 %1456 }
 0x20f   : > { %v2709_v61 = vpop.f32.mrf.mxu2  ;;  %v2711_v62 = vpop.f32.mrf.mxu3 }
 0x211   : > { %v1356_v63 = vpop.permute.xlu0 %1355  ;;  %v1358_v0 = vpop.permute.xlu1 %1357 }
 0x212   : > { %v1364_v1 = vsel %vm1311_vm10, %v1356_v63, %v1358_v0  ;;  %v1365_v6 = vsel %vm1311_vm10, %v1358_v0, %v1360_v51  ;;  %v2715_v2 = vpop.f32.mrf.mxu0  ;;  %v2717_v3 = vpop.f32.mrf.mxu1  ;;  %v1587_v51 = vld [vmem:[#allocation2 + $0x20] sm:$0xf] }
 0x213   : > { %v1376_v4 = vsel %vm580_vm6, %v1364_v1, 0  ;;  %v1379_v5 = vsel %vm580_vm6, %v1365_v6, 0 }
 0x214   : > { %1414 = vmatpush.bf16.msra.mxu2 %v1376_v4  ;;  %1427 = vmatpush.bf16.msra.mxu3 %v1379_v5 }
 0x217   : > { %1867 = vmatmul.msk.bf16.vlgmr.msra.gmra.mxu2 %vm576_vm8, %v1345_v7  ;;  %1868 = vmatmul.msk.bf16.vlgmr.msra.gmra.mxu3 %vm576_vm8, %v1345_v7  ;;  %v902_v9 = vpop.f32.mrf.mxu2  ;;  %v915_v10 = vpop.f32.mrf.mxu3 }
 0x219   : > { %v1352_v11 = vpop.permute.xlu0 %1351  ;;  %v1354_v40 = vpop.permute.xlu1 %1353 }
 0x21a   : > { %v1362_v12 = vsel %vm1311_vm10, %v1352_v11, %v1354_v40  ;;  %v1363_v14 = vsel %vm1311_vm10, %v1354_v40, %v1356_v63  ;;  %v876_v15 = vpop.f32.mrf.mxu0  ;;  %v889_v16 = vpop.f32.mrf.mxu1 }
 0x21b   : > { %v1370_v45 = vsel %vm580_vm6, %v1362_v12, 0  ;;  %v1373_v17 = vsel %vm580_vm6, %v1363_v14, 0  ;;  %v1600_v41 = vpop.permute.xlu2 %1599 }
 0x21c   : > { %1388 = vmatpush.bf16.msra.mxu0 %v1370_v45  ;;  %1401 = vmatpush.bf16.msra.mxu1 %v1373_v17 }
 0x21f   : > { %1865 = vmatmul.msk.bf16.vlgmr.msra.gmra.mxu0 %vm576_vm8, %v1345_v7  ;;  %1866 = vmatmul.msk.bf16.vlgmr.msra.gmra.mxu1 %vm576_vm8, %v1345_v7  ;;  %v2729_v49 = vpop.f32.mrf.mxu2  ;;  %v2731_v53 = vpop.f32.mrf.mxu3 }
 0x221   : > { %v1463_v19 = vpop.permute.xlu0 %1462  ;;  %v1465_v20 = vpop.permute.xlu1 %1464 }
 0x222   : > { %v1469_v21 = vsel %vm1466_vm15, %v1461_v8, %v1463_v19  ;;  %v1470_v22 = vsel %vm1466_vm15, %v1463_v19, %v1465_v20  ;;  %v2735_v23 = vpop.f32.mrf.mxu0  ;;  %v2737_v24 = vpop.f32.mrf.mxu1 }
 0x223   : > { %v1481_v25 = vsel %vm580_vm6, %v1469_v21, 0  ;;  %v1484_v26 = vsel %vm580_vm6, %v1470_v22, 0  ;;  %v1596_v54 = vpop.permute.xlu2 %1595 }
 0x224   : > { %1519 = vmatpush.bf16.msrb.mxu2 %v1481_v25  ;;  %1532 = vmatpush.bf16.msrb.mxu3 %v1484_v26 }
 0x227   : > { %1871 = vmatmul.msk.bf16.vlgmr.msrb.gmra.mxu2 %vm576_vm8, %v1440_v37  ;;  %1872 = vmatmul.msk.bf16.vlgmr.msrb.gmra.mxu3 %vm576_vm8, %v1440_v37  ;;  %v1039_v28 = vpop.f32.mrf.mxu2  ;;  %v1052_v31 = vpop.f32.mrf.mxu3 }
 0x229   : > { %v1459_v32 = vpop.permute.xlu0 %1458 }
 0x22a   : > { %v1467_v34 = vsel %vm1466_vm15, %v1457_v18, %v1459_v32  ;;  %v1468_v36 = vsel %vm1466_vm15, %v1459_v32, %v1461_v8  ;;  %v1013_v38 = vpop.f32.mrf.mxu0  ;;  %v1026_v39 = vpop.f32.mrf.mxu1 }
 0x22b   : > { %v1475_v44 = vsel %vm580_vm6, %v1467_v34, 0  ;;  %v1478_v13 = vsel %vm580_vm6, %v1468_v36, 0 }
 0x22c   : > { %1493 = vmatpush.bf16.msrb.mxu0 %v1475_v44  ;;  %1506 = vmatpush.bf16.msrb.mxu1 %v1478_v13 }
 0x22f   : > { %1869 = vmatmul.msk.bf16.vlgmr.msrb.gmra.mxu0 %vm576_vm8, %v1440_v37  ;;  %1870 = vmatmul.msk.bf16.vlgmr.msrb.gmra.mxu1 %vm576_vm8, %v1440_v37  ;;  %v1142_v42 = vpop.f32.mrf.mxu2  ;;  %v1155_v43 = vpop.f32.mrf.mxu3 }
 0x231   : > { %v1602_v46 = vpop.permute.xlu0 %1601 }
 0x232   : > { %v1607_v50 = vsel %vm1603_vm0, %v1600_v41, %v1602_v46  ;;  %v1116_v35 = vpop.f32.mrf.mxu0  ;;  %v1129_v33 = vpop.f32.mrf.mxu1 }
 0x233   : > { %v1621_v57 = vsel %vm580_vm6, %v1607_v50, 0  ;;  %v1598_v58 = vpop.permute.xlu1 %1597 }
 0x234   : > { %v1605_v59 = vsel %vm1603_vm0, %v1596_v54, %v1598_v58  ;;  %v1606_v60 = vsel %vm1603_vm0, %v1598_v58, %v1600_v41  ;;  %1669 = vmatpush.bf16.msra.mxu3 %v1621_v57 }
 0x235   : > { %v1615_v63 = vsel %vm580_vm6, %v1605_v59, 0  ;;  %v1618_v0 = vsel %vm580_vm6, %v1606_v60, 0 }
 0x236   : > { %1643 = vmatpush.bf16.msra.mxu1 %v1615_v63  ;;  %1656 = vmatpush.bf16.msra.mxu2 %v1618_v0 }
 0x237   : > { %1876 = vmatmul.msk.bf16.vlgmr.msra.gmra.mxu3 %vm576_vm8, %v1587_v51  ;;  %v1144_v1 = vpop.f32.mrf.mxu2  ;;  %v1157_v6 = vpop.f32.mrf.mxu3 }
 0x239   : > { %1875 = vmatmul.msk.bf16.vlgmr.msra.gmra.mxu2 %vm576_vm8, %v1587_v51  ;;  %v518_v4 = vpop.permute.xlu0 %517 }
 0x23a   : > { %v645_v5 = vadd.f32 %v2693_v47, %v518_v4  ;;  %v646_v7 = vadd.f32 %v2695_v48, %v518_v4  ;;  %v647_v8 = vadd.f32 %v2697_v29, %v518_v4  ;;  %v648_v9 = vadd.f32 %v2699_v30, %v518_v4  ;;  %v1118_v10 = vpop.f32.mrf.mxu0  ;;  %v1131_v11 = vpop.f32.mrf.mxu1 }
 0x23b   : > { %v1594_v40 = vpop.permute.xlu1 %1593 }
 0x23c   : > { %v1604_v12 = vsel %vm1603_vm0, %v1594_v40, %v1596_v54  ;;  %v750_v14 = vadd.f32 %v2701_v55, %v645_v5  ;;  %v751_v15 = vadd.f32 %v2703_v56, %v646_v7  ;;  %v752_v16 = vadd.f32 %v2705_v52, %v647_v8 }
 0x23d   : > { %v1612_v45 = vsel %vm580_vm6, %v1604_v12, 0  ;;  %v753_v47 = vadd.f32 %v2707_v27, %v648_v9 }
 0x23e   : > { %1630 = vmatpush.bf16.msra.mxu0 %v1612_v45  ;;  %v917_v48 = vadd.f32 %v2715_v2, %v750_v14  ;;  %v918_v29 = vadd.f32 %v2717_v3, %v751_v15  ;;  %v919_v30 = vadd.f32 %v2709_v61, %v752_v16 }
 0x23f   : > { %1874 = vmatmul.msk.bf16.vlgmr.msra.gmra.mxu1 %vm576_vm8, %v1587_v51  ;;  %v1279_v17 = vpop.f32.mrf.mxu2  ;;  %v920_v55 = vadd.f32 %v2711_v62, %v753_v47  ;;  %v1292_v18 = vpop.f32.mrf.mxu3 }
 0x240   : > { %v1054_v56 = vadd.f32 %v2735_v23, %v917_v48  ;;  %v1055_v52 = vadd.f32 %v2737_v24, %v918_v29  ;;  %v1056_v19 = vadd.f32 %v2729_v49, %v919_v30 }
 0x241   : > { %1873 = vmatmul.msk.bf16.vlgmr.msra.gmra.mxu0 %vm576_vm8, %v1587_v51  ;;  %v1057_v27 = vadd.f32 %v2731_v53, %v920_v55 }
 0x242   : > { %v1159_v2 = vadd.f32 %v1116_v35, %v1054_v56  ;;  %v1253_v3 = vpop.f32.mrf.mxu0  ;;  %v1160_v20 = vadd.f32 %v1129_v33, %v1055_v52  ;;  %v1266_v61 = vpop.f32.mrf.mxu1  ;;  %v1161_v21 = vadd.f32 %v1142_v42, %v1056_v19 }
 0x243   : > { %v1162_v22 = vadd.f32 %v1155_v43, %v1057_v27 }
 0x244   : > { %v1296_v25 = vadd.f32 %v1253_v3, %v1159_v2  ;;  %v1297_v26 = vadd.f32 %v1266_v61, %v1160_v20  ;;  %v1298_v62 = vadd.f32 %v1279_v17, %v1161_v21 }
 0x245   : > { %v1299_v37 = vadd.f32 %v1292_v18, %v1162_v22 }
 0x247   : > { %v1281_v28 = vpop.f32.mrf.mxu2  ;;  %v1294_v23 = vpop.f32.mrf.mxu3 }
 0x24a   : > { %v1255_v31 = vpop.f32.mrf.mxu0  ;;  %v1268_v24 = vpop.f32.mrf.mxu1 }
 0x29a   : > { %v1416_v49 = vpop.f32.mrf.mxu2  ;;  %v1429_v41 = vpop.f32.mrf.mxu3 }
 0x29b   : > { %v1436_v54 = vadd.f32 %v1429_v41, %v1299_v37  ;;  %v1435_v57 = vadd.f32 %v1416_v49, %v1298_v62 }
 0x29c   : > { %v1390_v32 = vpop.f32.mrf.mxu0  ;;  %v1403_v53 = vpop.f32.mrf.mxu1 }
 0x29d   : > { %v1434_v58 = vadd.f32 %v1403_v53, %v1297_v26  ;;  %v1433_v51 = vadd.f32 %v1390_v32, %v1296_v25 }
 0x2a2   : > { %v1418_v34 = vpop.f32.mrf.mxu2  ;;  %v1431_v36 = vpop.f32.mrf.mxu3 }
 0x2a4   : > { %v1392_v38 = vpop.f32.mrf.mxu0  ;;  %v1405_v39 = vpop.f32.mrf.mxu1 }
 0x2aa   : > { %v1521_v44 = vpop.f32.mrf.mxu2  ;;  %v1534_v13 = vpop.f32.mrf.mxu3 }
 0x2ab   : > { %v1541_v59 = vadd.f32 %v1534_v13, %v1436_v54  ;;  %v1540_v63 = vadd.f32 %v1521_v44, %v1435_v57 }
 0x2ac   : > { %v1495_v42 = vpop.f32.mrf.mxu0  ;;  %v1508_v43 = vpop.f32.mrf.mxu1 }
 0x2ad   : > { %v1539_v0 = vadd.f32 %v1508_v43, %v1434_v58  ;;  %v1538_v5 = vadd.f32 %v1495_v42, %v1433_v51 }
 0x2b2   : > { %v1536_v46 = vpop.f32.mrf.mxu3  ;;  %v1523_v50 = vpop.f32.mrf.mxu2 }
 0x2b4   : > { %v1510_v35 = vpop.f32.mrf.mxu1  ;;  %v1497_v33 = vpop.f32.mrf.mxu0 }
 0x2ba   : > { %v1671_v60 = vpop.f32.mrf.mxu3 }
 0x2bb   : > { %v1678_v1 = vadd.f32 %v1671_v60, %v1541_v59 }
 0x2bc   : > { %v1645_v6 = vpop.f32.mrf.mxu1  ;;  %v1658_v4 = vpop.f32.mrf.mxu2 }
 0x2bd   : > { %v1682_v7 = vmax.f32 %v1678_v1, 0.0  ;;  %v1676_v8 = vadd.f32 %v1645_v6, %v1539_v0  ;;  %v1677_v9 = vadd.f32 %v1658_v4, %v1540_v63 }
 0x2be   : > { %v1632_v10 = vpop.f32.mrf.mxu0 }
 0x2bf   : > { %1686 = vst [vmem:[%s2340_s12 + $0x18] sm:$0xff] %v1682_v7  ;;  %v1680_v11 = vmax.f32 %v1676_v8, 0.0  ;;  %v1681_v40 = vmax.f32 %v1677_v9, 0.0  ;;  %v1675_v12 = vadd.f32 %v1632_v10, %v1538_v5 }
 0x2c1   : > { %1684 = vst [vmem:[%s2340_s12 + $0x8] sm:$0xff] %v1680_v11  ;;  %v1679_v14 = vmax.f32 %v1675_v12, 0.0 }
 0x2c2   : > { %1685 = vst [vmem:[%s2340_s12 + $0x10] sm:$0xff] %v1681_v40  ;;  %v1673_v15 = vpop.f32.mrf.mxu3 }
 0x2c3   : > { %1683 = vst [vmem:[%s2340_s12] sm:$0xff] %v1679_v14 }
 0x2c4   : > { %v1647_v16 = vpop.f32.mrf.mxu1  ;;  %v1660_v45 = vpop.f32.mrf.mxu2 }
 0x2c5   : > { %2127 = shalt.err (!%p2124_p12)
}
 0x2c6   : > { %1968 = dma.vmem_to_hbm [thread:$0]  (%p2306_p3), %s1704_s28, 512, %s1706_s20, %s1688_s21   ;;  %v1634_v47 = vpop.f32.mrf.mxu0 }
 0x2c7 PF: > { %p1980_p13 = scmp.ge.s32.totalorder %s2198_s8, 2  ;;  %s1717_s12 = sand.u32 1, %s2170_s24  }
 0x2c8   : > { %s1718_s19 = scalar_lea.sflag [#allocation5], %s1717_s12 }
 0x2c9   : > { %p1975_p0 = pnand %p1980_p13, %p2315_p8 }
 0x2cb   : > { %p1976_p1 = pneg %p1975_p0 }
 0x2cd   : > { %2165 = dma.done.wait (%p1976_p1), %s1718_s19, 512  }
 0x2ce   : > { %2167 = vsyncadd (%p1976_p1), %s1718_s19, 4294966784  ;;  %s21_s8 = sadd.s32 1, %s2198_s8   ;;  %s2851_s27 = sld [smem:[#allocation10_spill]] }
 0x2cf   : > { %p18_p2 = scmp.ge.s32.totalorder %s21_s8, 6   ;;  %s2852_s28 = sld [smem:[#allocation11_spill]] }
 0x2d0   : > { %s2853_s29 = sld [smem:[#allocation12_spill]]  ;;  %s2855_s24 = smov %s2174_s25 }
 0x2d1   : > { %s2854_s30 = sld [smem:[#allocation13_spill]]  ;;  %s2856_s25 = smov %s2178_s26 }
 0x2d2   : > { %s2857_s26 = smov %s2326_s22  ;;  %20 = sbr.rel (!%p18_p2) target bundleno = 9 (0x9), region = 120 }
 0x2d7   :  { %1724 = vsyncpa [#allocation5], 1 }
 0x2d8   :  { %1726 = vsyncpa [#allocation5 + $0x1], 1 }
 0x2d9   :  { %1727 = vsyncpa [#allocation6], 1 }
 0x2da   :  { %1729 = vsyncpa [#allocation6 + $0x1], 1 }

</bundles_post_ra>
